<compile_context>
chip_gen: v6e
topology: v6e:2x2x1
jax: 0.10.0
libtpu: 0.0.40
codegen_flags: <defaults>
</compile_context>

<pallas_src>
import jax
import jax.numpy as jnp
import numpy as np
from jax.experimental import pallas as pl
from jax.experimental.pallas import tpu as pltpu


_VMEM_SPEC = pl.BlockSpec(memory_space=pltpu.MemorySpace.VMEM)


# ----------------------------- fused Pallas kernel --------------------------

def _build_kernel(T, BP, H, n_layers):
    """Fused bi-GRU (+head) kernel for static (T, padded batch BP, H, n_layers).

    Ref order:
      x_nat (T*BP, D0), x_rev (T*BP, D0),
      per layer: Wa (d_in,6H), Wb (d_in,6H), bias (1,6H), Whh (2H,6H), bhn (BP,2H),
      w_head (T*BP, 2H), bias_comb (1,1),
      out (BP,1),
      scratch: gi_s (T*BP,6H), ya_s (T*BP,2H), yb_s (T*BP,2H).

    Packed lane layout (2H = fwd|bwd): gate columns are [r | z | n], each 2H wide.
    At loop step s the packed state h = [h_fwd(s) | h_bwd(T-1-s)].
    """
    H2, H4, H6 = 2 * H, 4 * H, 6 * H

    def kernel(*refs):
        x_nat_ref, x_rev_ref = refs[0], refs[1]
        pos = 2
        layer_refs = []
        for _ in range(n_layers):
            layer_refs.append(refs[pos:pos + 5])
            pos += 5
        w_head_ref, bias_ref = refs[pos], refs[pos + 1]
        out_ref = refs[pos + 2]
        gi_s, ya_s, yb_s = refs[pos + 3], refs[pos + 4], refs[pos + 5]

        acc = jnp.zeros((BP, H2), jnp.float32)   # fused-head accumulator

        for l in range(n_layers):
            wa_ref, wb_ref, b_ref, whh_ref, bhn_ref = layer_refs[l]

            # ---- hoisted, lane-packed input projections -> VMEM scratch ----
            if l == 0:
                a_in = x_nat_ref[...]            # x(s)
                b_in = x_rev_ref[...]            # x(T-1-s)
            else:
                a_in = ya_s[...]                 # [h_f(s)      | h_b(T-1-s)]
                b_in = yb_s[...]                 # [h_f(T-1-s)  | h_b(s)    ]
            gi_s[...] = (
                jnp.dot(a_in, wa_ref[...], preferred_element_type=jnp.float32)
                + jnp.dot(b_in, wb_ref[...], preferred_element_type=jnp.float32)
                + b_ref[...])

            is_last = (l == n_layers - 1)
            h = jnp.zeros((BP, H2), jnp.float32)
            for s in range(T):                   # fully unrolled, T static
                row = slice(s * BP, (s + 1) * BP)            # 8-sublane aligned
                gi = gi_s[row, :]                            # (BP, 6H) aligned load
                # one gate-merged recurrent dot per step (W_hh reloaded per step)
                gh = jnp.dot(h, whh_ref[...],
                             preferred_element_type=jnp.float32)   # (BP, 6H)
                rz = jax.nn.sigmoid(gi[:, 0:H4] + gh[:, 0:H4])     # r|z, both dirs
                r = rz[:, 0:H2]
                z = rz[:, H2:H4]
                hn = gh[:, H4:H6] + bhn_ref[...]                   # b_hn stays inside r*(.)
                n = jnp.tanh(gi[:, H4:H6] + r * hn)
                h = n + z * (h - n)                                # (1-z)*n + z*h
                if is_last:
                    # head fused into the loop: acc += h * (w2⊗w_out) packed
                    acc = acc + h * w_head_ref[row, :]
                else:
                    ya_s[row, :] = h                               # natural arrangement
                    yb_s[(T - 1 - s) * BP:(T - s) * BP, :] = h     # time-reversed arrangement

        o = jnp.sum(acc, axis=-1, keepdims=True) + bias_ref[...]
        out_ref[...] = jax.nn.sigmoid(o)

    return kernel


# ----------------------------- one-time parameter repacking ------------------

def prepare_params(params, n_poses, input_size, batch_size):
    """One-time host-side repacking of raw PyTorch-layout params into the
    lane-packed layout the fused kernel consumes.  Call once, outside jit."""
    T = n_poses
    gru = params["gru"]
    n_layers = len(gru)
    H = int(np.asarray(gru[0]["fwd"]["whh"]).shape[1])
    H2, H6 = 2 * H, 6 * H
    BP = ((batch_size + 7) // 8) * 8

    def npa(x):
        return np.asarray(x, dtype=np.float32)

    layers = []
    for l in range(n_layers):
        d_in = input_size if l == 0 else H2
        pf, pb = gru[l]["fwd"], gru[l]["bwd"]
        wih_f, whh_f, bih_f, bhh_f = (npa(pf[k]) for k in ("wih", "whh", "bih", "bhh"))
        wih_b, whh_b, bih_b, bhh_b = (npa(pb[k]) for k in ("wih", "whh", "bih", "bhh"))

        Wa = np.zeros((d_in, H6), np.float32)
        Wb = np.zeros((d_in, H6), np.float32)
        Whh = np.zeros((H2, H6), np.float32)
        bias = np.zeros((1, H6), np.float32)
        for g in range(3):                       # gate order r, z, n
            gs = slice(g * H, (g + 1) * H)
            fcol = slice(g * H2, g * H2 + H)     # fwd lanes of gate g
            bcol = slice(g * H2 + H, (g + 1) * H2)  # bwd lanes of gate g
            wf_g = wih_f[gs, :].T                # (d_in, H)
            wb_g = wih_b[gs, :].T
            if l == 0:
                Wa[:, fcol] = wf_g               # x(s)       -> fwd gates
                Wb[:, bcol] = wb_g               # x(T-1-s)   -> bwd gates
            else:
                Wa[0:H, fcol] = wf_g[0:H, :]     # h_f(s)     -> fwd gates
                Wb[H:H2, fcol] = wf_g[H:H2, :]   # h_b(s)     -> fwd gates
                Wb[0:H, bcol] = wb_g[0:H, :]     # h_f(T-1-s) -> bwd gates
                Wa[H:H2, bcol] = wb_g[H:H2, :]   # h_b(T-1-s) -> bwd gates
            Whh[0:H, fcol] = whh_f[gs, :].T      # block-diagonal per gate
            Whh[H:H2, bcol] = whh_b[gs, :].T
            # fold b_ih and the r/z halves of b_hh into the hoisted projection
            bias[0, fcol] = bih_f[gs] + (bhh_f[gs] if g < 2 else 0.0)
            bias[0, bcol] = bih_b[gs] + (bhh_b[gs] if g < 2 else 0.0)
        bhn = np.zeros((BP, H2), np.float32)     # b_hn stays inside r*(.)
        bhn[:, 0:H] = bhh_f[2 * H:3 * H][None, :]
        bhn[:, H:H2] = bhh_b[2 * H:3 * H][None, :]
        layers.append(tuple(jnp.asarray(a) for a in (Wa, Wb, bias, Whh, bhn)))

    # fuse out (H->1) and out2 (T->1):  o2[b] = sum_{t,h} y[b,t,h]*w2[t]*w_out[h] + c
    w_out = npa(params["w_out"]).reshape(H)
    b_out = float(npa(params["b_out"]).reshape(()))
    w2 = npa(params["w2"]).reshape(T)
    b2 = float(npa(params["b2"]).reshape(()))
    head = np.zeros((T, H2), np.float32)
    for s in range(T):
        head[s, 0:H] = w2[s] * w_out             # fwd half carries time s
        head[s, H:H2] = w2[T - 1 - s] * w_out    # bwd half carries time T-1-s
    w_head = np.ascontiguousarray(
        np.broadcast_to(head[:, None, :], (T, BP, H2)).reshape(T * BP, H2))
    bias_comb = np.array([[b_out * float(w2.sum()) + b2]], np.float32)

    return {
        "layers": layers,
        "w_head": jnp.asarray(w_head),
        "bias_comb": jnp.asarray(bias_comb),
    }


# ----------------------------- wrapper --------------------------------------

@jax.jit
def discriminator_forward(poses, packed):
    """poses: (B, T, input_size) float32 -> (B, 1) float32 (eval-mode GRU)."""
    layers = packed["layers"]
    w_head = packed["w_head"]
    bias_comb = packed["bias_comb"]
    n_layers = len(layers)
    H2 = layers[0][3].shape[0]              # Whh: (2H, 6H)
    H = H2 // 2
    BP = layers[0][4].shape[0]              # bhn: (BP, 2H)
    B, T, D0 = poses.shape
    assert B <= BP and T * BP == w_head.shape[0]

    # per-call data layout only (no weight repacking here)
    x_tm = jnp.transpose(poses.astype(jnp.float32), (1, 0, 2))   # (T, B, D0)
    if BP != B:
        x_tm = jnp.pad(x_tm, ((0, 0), (0, BP - B), (0, 0)))
    x_nat = x_tm.reshape(T * BP, D0)
    x_rev = x_tm[::-1].reshape(T * BP, D0)

    args = [x_nat, x_rev]
    for l in range(n_layers):
        args.extend(layers[l])
    args.append(w_head)
    args.append(bias_comb)

    out = pl.pallas_call(
        _build_kernel(T, BP, H, n_layers),
        out_shape=jax.ShapeDtypeStruct((BP, 1), jnp.float32),
        in_specs=[_VMEM_SPEC] * len(args),
        out_specs=_VMEM_SPEC,
        scratch_shapes=[
            pltpu.VMEM((T * BP, 6 * H), jnp.float32),   # staged gate projections
            pltpu.VMEM((T * BP, 2 * H), jnp.float32),   # layer output (natural)
            pltpu.VMEM((T * BP, 2 * H), jnp.float32),   # layer output (time-reversed)
        ],
    )(*args)
    return out[:B]


# ----------------------------- parameter init -------------------------------

def make_params(key, input_size, hidden, n_layers, n_poses):
    """Raw PyTorch-layout parameters (W_ih (3H,Din), W_hh (3H,H), gates [r|z|n])."""
    k = 1.0 / np.sqrt(hidden)
    params = {"gru": []}
    for layer in range(n_layers):
        d_in = input_size if layer == 0 else 2 * hidden
        layer_p = {}
        for dname in ("fwd", "bwd"):
            key, k1, k2, k3, k4 = jax.random.split(key, 5)
            layer_p[dname] = {
                "wih": jax.random.uniform(k1, (3 * hidden, d_in), jnp.float32, -k, k),
                "whh": jax.random.uniform(k2, (3 * hidden, hidden), jnp.float32, -k, k),
                "bih": jax.random.uniform(k3, (3 * hidden,), jnp.float32, -k, k),
                "bhh": jax.random.uniform(k4, (3 * hidden,), jnp.float32, -k, k),
            }
        params["gru"].append(layer_p)
    ko = 1.0 / np.sqrt(hidden)
    k2c = 1.0 / np.sqrt(n_poses)
    key, a, b, c, d = jax.random.split(key, 5)
    params["w_out"] = jax.random.uniform(a, (1, hidden), jnp.float32, -ko, ko)
    params["b_out"] = jax.random.uniform(b, (1,), jnp.float32, -ko, ko)
    params["w2"] = jax.random.uniform(c, (1, n_poses), jnp.float32, -k2c, k2c)
    params["b2"] = jax.random.uniform(d, (1,), jnp.float32, -k2c, k2c)
    return params


# ----------------------------- pure-JAX reference ----------------------------

def _gru_dir_ref(x_tm, wih, whh, bih, bhh):
    H = whh.shape[1]
    B = x_tm.shape[1]

    def step(h, x_t):
        gi = x_t @ wih.T + bih
        gh = h @ whh.T + bhh
        r = jax.nn.sigmoid(gi[:, :H] + gh[:, :H])
        z = jax.nn.sigmoid(gi[:, H:2 * H] + gh[:, H:2 * H])
        n = jnp.tanh(gi[:, 2 * H:] + r * gh[:, 2 * H:])
        h_new = (1.0 - z) * n + z * h
        return h_new, h_new

    _, ys = jax.lax.scan(step, jnp.zeros((B, H), jnp.float32), x_tm)
    return ys


def discriminator_ref(poses, params):
    x = poses.astype(jnp.float32)
    n_layers = len(params["gru"])
    H = params["gru"][0]["fwd"]["whh"].shape[1]
    yf = yb = None
    for l in range(n_layers):
        p = params["gru"][l]
        x_tm = jnp.transpose(x, (1, 0, 2))
        yf = _gru_dir_ref(x_tm, **p["fwd"])
        yb = jnp.flip(_gru_dir_ref(jnp.flip(x_tm, 0), **p["bwd"]), 0)
        x = jnp.transpose(jnp.concatenate([yf, yb], -1), (1, 0, 2))
    y_sum = jnp.transpose(yf + yb, (1, 0, 2))  # (B, T, H)
    B, T, _ = y_sum.shape
    o1 = (y_sum.reshape(B * T, H) @ params["w_out"].T + params["b_out"]).reshape(B, T)
    o2 = o1 @ params["w2"].T + params["b2"]
    return jax.nn.sigmoid(o2)


# ----------------------------- main ------------------------------------------

if __name__ == "__main__":
    # args: hidden_size=32, n_layers=2, n_poses=8; input feature dim = 16
    B, T, INPUT_SIZE, HIDDEN, N_LAYERS = 2, 8, 16, 32, 2

    key = jax.random.PRNGKey(0)
    key, kp = jax.random.split(key)
    poses = jax.random.normal(kp, (B, T, INPUT_SIZE), jnp.float32)
    params = make_params(key, INPUT_SIZE, HIDDEN, N_LAYERS, T)

    packed = prepare_params(params, T, INPUT_SIZE, B)   # one-time repack (host)

    out = jax.block_until_ready(discriminator_forward(poses, packed))
    ref = discriminator_ref(poses, params)

    assert out.shape == (B, 1)
    assert np.allclose(np.asarray(out), np.asarray(ref), rtol=1e-3, atol=1e-3), (
        f"mismatch: {np.max(np.abs(np.asarray(out) - np.asarray(ref)))}")

    print("KERNEL_OK")
</pallas_src>

<mosaic_0001>
module attributes {stable_mosaic.version = 11 : i64} {
  func.func @kernel(%arg0: memref<64x16xf32, #tpu.memory_space<vmem>>, %arg1: memref<64x16xf32, #tpu.memory_space<vmem>>, %arg2: memref<16x192xf32, #tpu.memory_space<vmem>>, %arg3: memref<16x192xf32, #tpu.memory_space<vmem>>, %arg4: memref<1x192xf32, #tpu.memory_space<vmem>>, %arg5: memref<64x192xf32, #tpu.memory_space<vmem>>, %arg6: memref<8x64xf32, #tpu.memory_space<vmem>>, %arg7: memref<64x192xf32, #tpu.memory_space<vmem>>, %arg8: memref<64x192xf32, #tpu.memory_space<vmem>>, %arg9: memref<1x192xf32, #tpu.memory_space<vmem>>, %arg10: memref<64x192xf32, #tpu.memory_space<vmem>>, %arg11: memref<8x64xf32, #tpu.memory_space<vmem>>, %arg12: memref<64x64xf32, #tpu.memory_space<vmem>>, %arg13: memref<1x1xf32, #tpu.memory_space<vmem>>, %arg14: memref<8x1xf32, #tpu.memory_space<vmem>>, %arg15: memref<64x192xf32, #tpu.memory_space<vmem>>, %arg16: memref<64x64xf32, #tpu.memory_space<vmem>>, %arg17: memref<64x64xf32, #tpu.memory_space<vmem>>) attributes {dimension_semantics = [], scalar_prefetch = 0 : i64, scratch_operands = 3 : i64, tpu.core_type = #tpu.core_type<tc>} {
    %cst = arith.constant 0.000000e+00 : f32
    %0 = vector.broadcast %cst : f32 to vector<8x64xf32>
    %c0 = arith.constant 0 : index
    %c0_0 = arith.constant 0 : index
    %1 = vector.load %arg0[%c0, %c0_0] : memref<64x16xf32, #tpu.memory_space<vmem>>, vector<64x16xf32>
    %c0_1 = arith.constant 0 : index
    %c0_2 = arith.constant 0 : index
    %2 = vector.load %arg1[%c0_1, %c0_2] : memref<64x16xf32, #tpu.memory_space<vmem>>, vector<64x16xf32>
    %c0_3 = arith.constant 0 : index
    %c0_4 = arith.constant 0 : index
    %3 = vector.load %arg2[%c0_3, %c0_4] : memref<16x192xf32, #tpu.memory_space<vmem>>, vector<16x192xf32>
    %cst_5 = arith.constant dense<0.000000e+00> : vector<64x192xf32>
    %4 = tpu.matmul %1, %3, %cst_5 {dimension_numbers = #tpu.dot_dimension_numbers<[1], [0], [0], [1], [0, 0, 1, 1], [], []>} : vector<64x16xf32>, vector<16x192xf32>, vector<64x192xf32> -> vector<64x192xf32>
    %c0_6 = arith.constant 0 : index
    %c0_7 = arith.constant 0 : index
    %5 = vector.load %arg3[%c0_6, %c0_7] : memref<16x192xf32, #tpu.memory_space<vmem>>, vector<16x192xf32>
    %cst_8 = arith.constant dense<0.000000e+00> : vector<64x192xf32>
    %6 = tpu.matmul %2, %5, %cst_8 {dimension_numbers = #tpu.dot_dimension_numbers<[1], [0], [0], [1], [0, 0, 1, 1], [], []>} : vector<64x16xf32>, vector<16x192xf32>, vector<64x192xf32> -> vector<64x192xf32>
    %7 = arith.addf %4, %6 : vector<64x192xf32>
    %c0_9 = arith.constant 0 : index
    %c0_10 = arith.constant 0 : index
    %8 = vector.load %arg4[%c0_9, %c0_10] : memref<1x192xf32, #tpu.memory_space<vmem>>, vector<1x192xf32>
    %9 = vector.broadcast %8 : vector<1x192xf32> to vector<64x192xf32>
    %10 = arith.addf %7, %9 : vector<64x192xf32>
    %c0_11 = arith.constant 0 : index
    %c0_12 = arith.constant 0 : index
    %11 = vector.load %arg15[%c0_11, %c0_12] : memref<64x192xf32, #tpu.memory_space<vmem>>, vector<64x192xf32>
    tpu.vector_store %arg15[%c0_11, %c0_12], %10 {strides = array<i32>} : memref<64x192xf32, #tpu.memory_space<vmem>>, vector<64x192xf32>,
    %cst_13 = arith.constant 0.000000e+00 : f32
    %12 = vector.broadcast %cst_13 : f32 to vector<8x64xf32>
    %c0_14 = arith.constant 0 : index
    %c0_15 = arith.constant 0 : index
    %13 = vector.load %arg15[%c0_14, %c0_15] : memref<64x192xf32, #tpu.memory_space<vmem>>, vector<8x192xf32>
    %c0_16 = arith.constant 0 : index
    %c0_17 = arith.constant 0 : index
    %14 = vector.load %arg5[%c0_16, %c0_17] : memref<64x192xf32, #tpu.memory_space<vmem>>, vector<64x192xf32>
    %cst_18 = arith.constant dense<0.000000e+00> : vector<8x192xf32>
    %15 = tpu.matmul %12, %14, %cst_18 {dimension_numbers = #tpu.dot_dimension_numbers<[1], [0], [0], [1], [0, 0, 1, 1], [], []>} : vector<8x64xf32>, vector<64x192xf32>, vector<8x192xf32> -> vector<8x192xf32>
    %16 = vector.extract_strided_slice %13 {offsets = [0, 0], sizes = [8, 128], strides = [1, 1]} : vector<8x192xf32> to vector<8x128xf32>
    %17 = vector.extract_strided_slice %15 {offsets = [0, 0], sizes = [8, 128], strides = [1, 1]} : vector<8x192xf32> to vector<8x128xf32>
    %18 = arith.addf %16, %17 : vector<8x128xf32>
    %19 = arith.negf %18 : vector<8x128xf32>
    %20 = math.exp %19 : vector<8x128xf32>
    %cst_19 = arith.constant 1.000000e+00 : f32
    %21 = vector.broadcast %cst_19 : f32 to vector<8x128xf32>
    %22 = arith.addf %21, %20 : vector<8x128xf32>
    %23 = arith.divf %21, %22 : vector<8x128xf32>
    %24 = vector.extract_strided_slice %23 {offsets = [0, 0], sizes = [8, 64], strides = [1, 1]} : vector<8x128xf32> to vector<8x64xf32>
    %25 = vector.extract_strided_slice %23 {offsets = [0, 64], sizes = [8, 64], strides = [1, 1]} : vector<8x128xf32> to vector<8x64xf32>
    %26 = vector.extract_strided_slice %15 {offsets = [0, 128], sizes = [8, 64], strides = [1, 1]} : vector<8x192xf32> to vector<8x64xf32>
    %c0_20 = arith.constant 0 : index
    %c0_21 = arith.constant 0 : index
    %27 = vector.load %arg6[%c0_20, %c0_21] : memref<8x64xf32, #tpu.memory_space<vmem>>, vector<8x64xf32>
    %28 = arith.addf %26, %27 : vector<8x64xf32>
    %29 = vector.extract_strided_slice %13 {offsets = [0, 128], sizes = [8, 64], strides = [1, 1]} : vector<8x192xf32> to vector<8x64xf32>
    %30 = arith.mulf %24, %28 : vector<8x64xf32>
    %31 = arith.addf %29, %30 : vector<8x64xf32>
    %32 = math.tanh %31 : vector<8x64xf32>
    %33 = arith.subf %12, %32 : vector<8x64xf32>
    %34 = arith.mulf %25, %33 : vector<8x64xf32>
    %35 = arith.addf %32, %34 : vector<8x64xf32>
    %c0_22 = arith.constant 0 : index
    %c0_23 = arith.constant 0 : index
    %36 = vector.load %arg16[%c0_22, %c0_23] : memref<64x64xf32, #tpu.memory_space<vmem>>, vector<8x64xf32>
    tpu.vector_store %arg16[%c0_22, %c0_23], %35 {strides = array<i32>} : memref<64x64xf32, #tpu.memory_space<vmem>>, vector<8x64xf32>,
    %c56 = arith.constant 56 : index
    %c0_24 = arith.constant 0 : index
    %37 = vector.load %arg17[%c56, %c0_24] : memref<64x64xf32, #tpu.memory_space<vmem>>, vector<8x64xf32>
    tpu.vector_store %arg17[%c56, %c0_24], %35 {strides = array<i32>} : memref<64x64xf32, #tpu.memory_space<vmem>>, vector<8x64xf32>,
    %c8 = arith.constant 8 : index
    %c0_25 = arith.constant 0 : index
    %38 = vector.load %arg15[%c8, %c0_25] : memref<64x192xf32, #tpu.memory_space<vmem>>, vector<8x192xf32>
    %c0_26 = arith.constant 0 : index
    %c0_27 = arith.constant 0 : index
    %39 = vector.load %arg5[%c0_26, %c0_27] : memref<64x192xf32, #tpu.memory_space<vmem>>, vector<64x192xf32>
    %cst_28 = arith.constant dense<0.000000e+00> : vector<8x192xf32>
    %40 = tpu.matmul %35, %39, %cst_28 {dimension_numbers = #tpu.dot_dimension_numbers<[1], [0], [0], [1], [0, 0, 1, 1], [], []>} : vector<8x64xf32>, vector<64x192xf32>, vector<8x192xf32> -> vector<8x192xf32>
    %41 = vector.extract_strided_slice %38 {offsets = [0, 0], sizes = [8, 128], strides = [1, 1]} : vector<8x192xf32> to vector<8x128xf32>
    %42 = vector.extract_strided_slice %40 {offsets = [0, 0], sizes = [8, 128], strides = [1, 1]} : vector<8x192xf32> to vector<8x128xf32>
    %43 = arith.addf %41, %42 : vector<8x128xf32>
    %44 = arith.negf %43 : vector<8x128xf32>
    %45 = math.exp %44 : vector<8x128xf32>
    %cst_29 = arith.constant 1.000000e+00 : f32
    %46 = vector.broadcast %cst_29 : f32 to vector<8x128xf32>
    %47 = arith.addf %46, %45 : vector<8x128xf32>
    %48 = arith.divf %46, %47 : vector<8x128xf32>
    %49 = vector.extract_strided_slice %48 {offsets = [0, 0], sizes = [8, 64], strides = [1, 1]} : vector<8x128xf32> to vector<8x64xf32>
    %50 = vector.extract_strided_slice %48 {offsets = [0, 64], sizes = [8, 64], strides = [1, 1]} : vector<8x128xf32> to vector<8x64xf32>
    %51 = vector.extract_strided_slice %40 {offsets = [0, 128], sizes = [8, 64], strides = [1, 1]} : vector<8x192xf32> to vector<8x64xf32>
    %c0_30 = arith.constant 0 : index
    %c0_31 = arith.constant 0 : index
    %52 = vector.load %arg6[%c0_30, %c0_31] : memref<8x64xf32, #tpu.memory_space<vmem>>, vector<8x64xf32>
    %53 = arith.addf %51, %52 : vector<8x64xf32>
    %54 = vector.extract_strided_slice %38 {offsets = [0, 128], sizes = [8, 64], strides = [1, 1]} : vector<8x192xf32> to vector<8x64xf32>
    %55 = arith.mulf %49, %53 : vector<8x64xf32>
    %56 = arith.addf %54, %55 : vector<8x64xf32>
    %57 = math.tanh %56 : vector<8x64xf32>
    %58 = arith.subf %35, %57 : vector<8x64xf32>
    %59 = arith.mulf %50, %58 : vector<8x64xf32>
    %60 = arith.addf %57, %59 : vector<8x64xf32>
    %c8_32 = arith.constant 8 : index
    %c0_33 = arith.constant 0 : index
    %61 = vector.load %arg16[%c8_32, %c0_33] : memref<64x64xf32, #tpu.memory_space<vmem>>, vector<8x64xf32>
    tpu.vector_store %arg16[%c8_32, %c0_33], %60 {strides = array<i32>} : memref<64x64xf32, #tpu.memory_space<vmem>>, vector<8x64xf32>,
    %c48 = arith.constant 48 : index
    %c0_34 = arith.constant 0 : index
    %62 = vector.load %arg17[%c48, %c0_34] : memref<64x64xf32, #tpu.memory_space<vmem>>, vector<8x64xf32>
    tpu.vector_store %arg17[%c48, %c0_34], %60 {strides = array<i32>} : memref<64x64xf32, #tpu.memory_space<vmem>>, vector<8x64xf32>,
    %c16 = arith.constant 16 : index
    %c0_35 = arith.constant 0 : index
    %63 = vector.load %arg15[%c16, %c0_35] : memref<64x192xf32, #tpu.memory_space<vmem>>, vector<8x192xf32>
    %c0_36 = arith.constant 0 : index
    %c0_37 = arith.constant 0 : index
    %64 = vector.load %arg5[%c0_36, %c0_37] : memref<64x192xf32, #tpu.memory_space<vmem>>, vector<64x192xf32>
    %cst_38 = arith.constant dense<0.000000e+00> : vector<8x192xf32>
    %65 = tpu.matmul %60, %64, %cst_38 {dimension_numbers = #tpu.dot_dimension_numbers<[1], [0], [0], [1], [0, 0, 1, 1], [], []>} : vector<8x64xf32>, vector<64x192xf32>, vector<8x192xf32> -> vector<8x192xf32>
    %66 = vector.extract_strided_slice %63 {offsets = [0, 0], sizes = [8, 128], strides = [1, 1]} : vector<8x192xf32> to vector<8x128xf32>
    %67 = vector.extract_strided_slice %65 {offsets = [0, 0], sizes = [8, 128], strides = [1, 1]} : vector<8x192xf32> to vector<8x128xf32>
    %68 = arith.addf %66, %67 : vector<8x128xf32>
    %69 = arith.negf %68 : vector<8x128xf32>
    %70 = math.exp %69 : vector<8x128xf32>
    %cst_39 = arith.constant 1.000000e+00 : f32
    %71 = vector.broadcast %cst_39 : f32 to vector<8x128xf32>
    %72 = arith.addf %71, %70 : vector<8x128xf32>
    %73 = arith.divf %71, %72 : vector<8x128xf32>
    %74 = vector.extract_strided_slice %73 {offsets = [0, 0], sizes = [8, 64], strides = [1, 1]} : vector<8x128xf32> to vector<8x64xf32>
    %75 = vector.extract_strided_slice %73 {offsets = [0, 64], sizes = [8, 64], strides = [1, 1]} : vector<8x128xf32> to vector<8x64xf32>
    %76 = vector.extract_strided_slice %65 {offsets = [0, 128], sizes = [8, 64], strides = [1, 1]} : vector<8x192xf32> to vector<8x64xf32>
    %c0_40 = arith.constant 0 : index
    %c0_41 = arith.constant 0 : index
    %77 = vector.load %arg6[%c0_40, %c0_41] : memref<8x64xf32, #tpu.memory_space<vmem>>, vector<8x64xf32>
    %78 = arith.addf %76, %77 : vector<8x64xf32>
    %79 = vector.extract_strided_slice %63 {offsets = [0, 128], sizes = [8, 64], strides = [1, 1]} : vector<8x192xf32> to vector<8x64xf32>
    %80 = arith.mulf %74, %78 : vector<8x64xf32>
    %81 = arith.addf %79, %80 : vector<8x64xf32>
    %82 = math.tanh %81 : vector<8x64xf32>
    %83 = arith.subf %60, %82 : vector<8x64xf32>
    %84 = arith.mulf %75, %83 : vector<8x64xf32>
    %85 = arith.addf %82, %84 : vector<8x64xf32>
    %c16_42 = arith.constant 16 : index
    %c0_43 = arith.constant 0 : index
    %86 = vector.load %arg16[%c16_42, %c0_43] : memref<64x64xf32, #tpu.memory_space<vmem>>, vector<8x64xf32>
    tpu.vector_store %arg16[%c16_42, %c0_43], %85 {strides = array<i32>} : memref<64x64xf32, #tpu.memory_space<vmem>>, vector<8x64xf32>,
    %c40 = arith.constant 40 : index
    %c0_44 = arith.constant 0 : index
    %87 = vector.load %arg17[%c40, %c0_44] : memref<64x64xf32, #tpu.memory_space<vmem>>, vector<8x64xf32>
    tpu.vector_store %arg17[%c40, %c0_44], %85 {strides = array<i32>} : memref<64x64xf32, #tpu.memory_space<vmem>>, vector<8x64xf32>,
    %c24 = arith.constant 24 : index
    %c0_45 = arith.constant 0 : index
    %88 = vector.load %arg15[%c24, %c0_45] : memref<64x192xf32, #tpu.memory_space<vmem>>, vector<8x192xf32>
    %c0_46 = arith.constant 0 : index
    %c0_47 = arith.constant 0 : index
    %89 = vector.load %arg5[%c0_46, %c0_47] : memref<64x192xf32, #tpu.memory_space<vmem>>, vector<64x192xf32>
    %cst_48 = arith.constant dense<0.000000e+00> : vector<8x192xf32>
    %90 = tpu.matmul %85, %89, %cst_48 {dimension_numbers = #tpu.dot_dimension_numbers<[1], [0], [0], [1], [0, 0, 1, 1], [], []>} : vector<8x64xf32>, vector<64x192xf32>, vector<8x192xf32> -> vector<8x192xf32>
    %91 = vector.extract_strided_slice %88 {offsets = [0, 0], sizes = [8, 128], strides = [1, 1]} : vector<8x192xf32> to vector<8x128xf32>
    %92 = vector.extract_strided_slice %90 {offsets = [0, 0], sizes = [8, 128], strides = [1, 1]} : vector<8x192xf32> to vector<8x128xf32>
    %93 = arith.addf %91, %92 : vector<8x128xf32>
    %94 = arith.negf %93 : vector<8x128xf32>
    %95 = math.exp %94 : vector<8x128xf32>
    %cst_49 = arith.constant 1.000000e+00 : f32
    %96 = vector.broadcast %cst_49 : f32 to vector<8x128xf32>
    %97 = arith.addf %96, %95 : vector<8x128xf32>
    %98 = arith.divf %96, %97 : vector<8x128xf32>
    %99 = vector.extract_strided_slice %98 {offsets = [0, 0], sizes = [8, 64], strides = [1, 1]} : vector<8x128xf32> to vector<8x64xf32>
    %100 = vector.extract_strided_slice %98 {offsets = [0, 64], sizes = [8, 64], strides = [1, 1]} : vector<8x128xf32> to vector<8x64xf32>
    %101 = vector.extract_strided_slice %90 {offsets = [0, 128], sizes = [8, 64], strides = [1, 1]} : vector<8x192xf32> to vector<8x64xf32>
    %c0_50 = arith.constant 0 : index
    %c0_51 = arith.constant 0 : index
    %102 = vector.load %arg6[%c0_50, %c0_51] : memref<8x64xf32, #tpu.memory_space<vmem>>, vector<8x64xf32>
    %103 = arith.addf %101, %102 : vector<8x64xf32>
    %104 = vector.extract_strided_slice %88 {offsets = [0, 128], sizes = [8, 64], strides = [1, 1]} : vector<8x192xf32> to vector<8x64xf32>
    %105 = arith.mulf %99, %103 : vector<8x64xf32>
    %106 = arith.addf %104, %105 : vector<8x64xf32>
    %107 = math.tanh %106 : vector<8x64xf32>
    %108 = arith.subf %85, %107 : vector<8x64xf32>
    %109 = arith.mulf %100, %108 : vector<8x64xf32>
    %110 = arith.addf %107, %109 : vector<8x64xf32>
    %c24_52 = arith.constant 24 : index
    %c0_53 = arith.constant 0 : index
    %111 = vector.load %arg16[%c24_52, %c0_53] : memref<64x64xf32, #tpu.memory_space<vmem>>, vector<8x64xf32>
    tpu.vector_store %arg16[%c24_52, %c0_53], %110 {strides = array<i32>} : memref<64x64xf32, #tpu.memory_space<vmem>>, vector<8x64xf32>,
    %c32 = arith.constant 32 : index
    %c0_54 = arith.constant 0 : index
    %112 = vector.load %arg17[%c32, %c0_54] : memref<64x64xf32, #tpu.memory_space<vmem>>, vector<8x64xf32>
    tpu.vector_store %arg17[%c32, %c0_54], %110 {strides = array<i32>} : memref<64x64xf32, #tpu.memory_space<vmem>>, vector<8x64xf32>,
    %c32_55 = arith.constant 32 : index
    %c0_56 = arith.constant 0 : index
    %113 = vector.load %arg15[%c32_55, %c0_56] : memref<64x192xf32, #tpu.memory_space<vmem>>, vector<8x192xf32>
    %c0_57 = arith.constant 0 : index
    %c0_58 = arith.constant 0 : index
    %114 = vector.load %arg5[%c0_57, %c0_58] : memref<64x192xf32, #tpu.memory_space<vmem>>, vector<64x192xf32>
    %cst_59 = arith.constant dense<0.000000e+00> : vector<8x192xf32>
    %115 = tpu.matmul %110, %114, %cst_59 {dimension_numbers = #tpu.dot_dimension_numbers<[1], [0], [0], [1], [0, 0, 1, 1], [], []>} : vector<8x64xf32>, vector<64x192xf32>, vector<8x192xf32> -> vector<8x192xf32>
    %116 = vector.extract_strided_slice %113 {offsets = [0, 0], sizes = [8, 128], strides = [1, 1]} : vector<8x192xf32> to vector<8x128xf32>
    %117 = vector.extract_strided_slice %115 {offsets = [0, 0], sizes = [8, 128], strides = [1, 1]} : vector<8x192xf32> to vector<8x128xf32>
    %118 = arith.addf %116, %117 : vector<8x128xf32>
    %119 = arith.negf %118 : vector<8x128xf32>
    %120 = math.exp %119 : vector<8x128xf32>
    %cst_60 = arith.constant 1.000000e+00 : f32
    %121 = vector.broadcast %cst_60 : f32 to vector<8x128xf32>
    %122 = arith.addf %121, %120 : vector<8x128xf32>
    %123 = arith.divf %121, %122 : vector<8x128xf32>
    %124 = vector.extract_strided_slice %123 {offsets = [0, 0], sizes = [8, 64], strides = [1, 1]} : vector<8x128xf32> to vector<8x64xf32>
    %125 = vector.extract_strided_slice %123 {offsets = [0, 64], sizes = [8, 64], strides = [1, 1]} : vector<8x128xf32> to vector<8x64xf32>
    %126 = vector.extract_strided_slice %115 {offsets = [0, 128], sizes = [8, 64], strides = [1, 1]} : vector<8x192xf32> to vector<8x64xf32>
    %c0_61 = arith.constant 0 : index
    %c0_62 = arith.constant 0 : index
    %127 = vector.load %arg6[%c0_61, %c0_62] : memref<8x64xf32, #tpu.memory_space<vmem>>, vector<8x64xf32>
    %128 = arith.addf %126, %127 : vector<8x64xf32>
    %129 = vector.extract_strided_slice %113 {offsets = [0, 128], sizes = [8, 64], strides = [1, 1]} : vector<8x192xf32> to vector<8x64xf32>
    %130 = arith.mulf %124, %128 : vector<8x64xf32>
    %131 = arith.addf %129, %130 : vector<8x64xf32>
    %132 = math.tanh %131 : vector<8x64xf32>
    %133 = arith.subf %110, %132 : vector<8x64xf32>
    %134 = arith.mulf %125, %133 : vector<8x64xf32>
    %135 = arith.addf %132, %134 : vector<8x64xf32>
    %c32_63 = arith.constant 32 : index
    %c0_64 = arith.constant 0 : index
    %136 = vector.load %arg16[%c32_63, %c0_64] : memref<64x64xf32, #tpu.memory_space<vmem>>, vector<8x64xf32>
    tpu.vector_store %arg16[%c32_63, %c0_64], %135 {strides = array<i32>} : memref<64x64xf32, #tpu.memory_space<vmem>>, vector<8x64xf32>,
    %c24_65 = arith.constant 24 : index
    %c0_66 = arith.constant 0 : index
    %137 = vector.load %arg17[%c24_65, %c0_66] : memref<64x64xf32, #tpu.memory_space<vmem>>, vector<8x64xf32>
    tpu.vector_store %arg17[%c24_65, %c0_66], %135 {strides = array<i32>} : memref<64x64xf32, #tpu.memory_space<vmem>>, vector<8x64xf32>,
    %c40_67 = arith.constant 40 : index
    %c0_68 = arith.constant 0 : index
    %138 = vector.load %arg15[%c40_67, %c0_68] : memref<64x192xf32, #tpu.memory_space<vmem>>, vector<8x192xf32>
    %c0_69 = arith.constant 0 : index
    %c0_70 = arith.constant 0 : index
    %139 = vector.load %arg5[%c0_69, %c0_70] : memref<64x192xf32, #tpu.memory_space<vmem>>, vector<64x192xf32>
    %cst_71 = arith.constant dense<0.000000e+00> : vector<8x192xf32>
    %140 = tpu.matmul %135, %139, %cst_71 {dimension_numbers = #tpu.dot_dimension_numbers<[1], [0], [0], [1], [0, 0, 1, 1], [], []>} : vector<8x64xf32>, vector<64x192xf32>, vector<8x192xf32> -> vector<8x192xf32>
    %141 = vector.extract_strided_slice %138 {offsets = [0, 0], sizes = [8, 128], strides = [1, 1]} : vector<8x192xf32> to vector<8x128xf32>
    %142 = vector.extract_strided_slice %140 {offsets = [0, 0], sizes = [8, 128], strides = [1, 1]} : vector<8x192xf32> to vector<8x128xf32>
    %143 = arith.addf %141, %142 : vector<8x128xf32>
    %144 = arith.negf %143 : vector<8x128xf32>
    %145 = math.exp %144 : vector<8x128xf32>
    %cst_72 = arith.constant 1.000000e+00 : f32
    %146 = vector.broadcast %cst_72 : f32 to vector<8x128xf32>
    %147 = arith.addf %146, %145 : vector<8x128xf32>
    %148 = arith.divf %146, %147 : vector<8x128xf32>
    %149 = vector.extract_strided_slice %148 {offsets = [0, 0], sizes = [8, 64], strides = [1, 1]} : vector<8x128xf32> to vector<8x64xf32>
    %150 = vector.extract_strided_slice %148 {offsets = [0, 64], sizes = [8, 64], strides = [1, 1]} : vector<8x128xf32> to vector<8x64xf32>
    %151 = vector.extract_strided_slice %140 {offsets = [0, 128], sizes = [8, 64], strides = [1, 1]} : vector<8x192xf32> to vector<8x64xf32>
    %c0_73 = arith.constant 0 : index
    %c0_74 = arith.constant 0 : index
    %152 = vector.load %arg6[%c0_73, %c0_74] : memref<8x64xf32, #tpu.memory_space<vmem>>, vector<8x64xf32>
    %153 = arith.addf %151, %152 : vector<8x64xf32>
    %154 = vector.extract_strided_slice %138 {offsets = [0, 128], sizes = [8, 64], strides = [1, 1]} : vector<8x192xf32> to vector<8x64xf32>
    %155 = arith.mulf %149, %153 : vector<8x64xf32>
    %156 = arith.addf %154, %155 : vector<8x64xf32>
    %157 = math.tanh %156 : vector<8x64xf32>
    %158 = arith.subf %135, %157 : vector<8x64xf32>
    %159 = arith.mulf %150, %158 : vector<8x64xf32>
    %160 = arith.addf %157, %159 : vector<8x64xf32>
    %c40_75 = arith.constant 40 : index
    %c0_76 = arith.constant 0 : index
    %161 = vector.load %arg16[%c40_75, %c0_76] : memref<64x64xf32, #tpu.memory_space<vmem>>, vector<8x64xf32>
    tpu.vector_store %arg16[%c40_75, %c0_76], %160 {strides = array<i32>} : memref<64x64xf32, #tpu.memory_space<vmem>>, vector<8x64xf32>,
    %c16_77 = arith.constant 16 : index
    %c0_78 = arith.constant 0 : index
    %162 = vector.load %arg17[%c16_77, %c0_78] : memref<64x64xf32, #tpu.memory_space<vmem>>, vector<8x64xf32>
    tpu.vector_store %arg17[%c16_77, %c0_78], %160 {strides = array<i32>} : memref<64x64xf32, #tpu.memory_space<vmem>>, vector<8x64xf32>,
    %c48_79 = arith.constant 48 : index
    %c0_80 = arith.constant 0 : index
    %163 = vector.load %arg15[%c48_79, %c0_80] : memref<64x192xf32, #tpu.memory_space<vmem>>, vector<8x192xf32>
    %c0_81 = arith.constant 0 : index
    %c0_82 = arith.constant 0 : index
    %164 = vector.load %arg5[%c0_81, %c0_82] : memref<64x192xf32, #tpu.memory_space<vmem>>, vector<64x192xf32>
    %cst_83 = arith.constant dense<0.000000e+00> : vector<8x192xf32>
    %165 = tpu.matmul %160, %164, %cst_83 {dimension_numbers = #tpu.dot_dimension_numbers<[1], [0], [0], [1], [0, 0, 1, 1], [], []>} : vector<8x64xf32>, vector<64x192xf32>, vector<8x192xf32> -> vector<8x192xf32>
    %166 = vector.extract_strided_slice %163 {offsets = [0, 0], sizes = [8, 128], strides = [1, 1]} : vector<8x192xf32> to vector<8x128xf32>
    %167 = vector.extract_strided_slice %165 {offsets = [0, 0], sizes = [8, 128], strides = [1, 1]} : vector<8x192xf32> to vector<8x128xf32>
    %168 = arith.addf %166, %167 : vector<8x128xf32>
    %169 = arith.negf %168 : vector<8x128xf32>
    %170 = math.exp %169 : vector<8x128xf32>
    %cst_84 = arith.constant 1.000000e+00 : f32
    %171 = vector.broadcast %cst_84 : f32 to vector<8x128xf32>
    %172 = arith.addf %171, %170 : vector<8x128xf32>
    %173 = arith.divf %171, %172 : vector<8x128xf32>
    %174 = vector.extract_strided_slice %173 {offsets = [0, 0], sizes = [8, 64], strides = [1, 1]} : vector<8x128xf32> to vector<8x64xf32>
    %175 = vector.extract_strided_slice %173 {offsets = [0, 64], sizes = [8, 64], strides = [1, 1]} : vector<8x128xf32> to vector<8x64xf32>
    %176 = vector.extract_strided_slice %165 {offsets = [0, 128], sizes = [8, 64], strides = [1, 1]} : vector<8x192xf32> to vector<8x64xf32>
    %c0_85 = arith.constant 0 : index
    %c0_86 = arith.constant 0 : index
    %177 = vector.load %arg6[%c0_85, %c0_86] : memref<8x64xf32, #tpu.memory_space<vmem>>, vector<8x64xf32>
    %178 = arith.addf %176, %177 : vector<8x64xf32>
    %179 = vector.extract_strided_slice %163 {offsets = [0, 128], sizes = [8, 64], strides = [1, 1]} : vector<8x192xf32> to vector<8x64xf32>
    %180 = arith.mulf %174, %178 : vector<8x64xf32>
    %181 = arith.addf %179, %180 : vector<8x64xf32>
    %182 = math.tanh %181 : vector<8x64xf32>
    %183 = arith.subf %160, %182 : vector<8x64xf32>
    %184 = arith.mulf %175, %183 : vector<8x64xf32>
    %185 = arith.addf %182, %184 : vector<8x64xf32>
    %c48_87 = arith.constant 48 : index
    %c0_88 = arith.constant 0 : index
    %186 = vector.load %arg16[%c48_87, %c0_88] : memref<64x64xf32, #tpu.memory_space<vmem>>, vector<8x64xf32>
    tpu.vector_store %arg16[%c48_87, %c0_88], %185 {strides = array<i32>} : memref<64x64xf32, #tpu.memory_space<vmem>>, vector<8x64xf32>,
    %c8_89 = arith.constant 8 : index
    %c0_90 = arith.constant 0 : index
    %187 = vector.load %arg17[%c8_89, %c0_90] : memref<64x64xf32, #tpu.memory_space<vmem>>, vector<8x64xf32>
    tpu.vector_store %arg17[%c8_89, %c0_90], %185 {strides = array<i32>} : memref<64x64xf32, #tpu.memory_space<vmem>>, vector<8x64xf32>,
    %c56_91 = arith.constant 56 : index
    %c0_92 = arith.constant 0 : index
    %188 = vector.load %arg15[%c56_91, %c0_92] : memref<64x192xf32, #tpu.memory_space<vmem>>, vector<8x192xf32>
    %c0_93 = arith.constant 0 : index
    %c0_94 = arith.constant 0 : index
    %189 = vector.load %arg5[%c0_93, %c0_94] : memref<64x192xf32, #tpu.memory_space<vmem>>, vector<64x192xf32>
    %cst_95 = arith.constant dense<0.000000e+00> : vector<8x192xf32>
    %190 = tpu.matmul %185, %189, %cst_95 {dimension_numbers = #tpu.dot_dimension_numbers<[1], [0], [0], [1], [0, 0, 1, 1], [], []>} : vector<8x64xf32>, vector<64x192xf32>, vector<8x192xf32> -> vector<8x192xf32>
    %191 = vector.extract_strided_slice %188 {offsets = [0, 0], sizes = [8, 128], strides = [1, 1]} : vector<8x192xf32> to vector<8x128xf32>
    %192 = vector.extract_strided_slice %190 {offsets = [0, 0], sizes = [8, 128], strides = [1, 1]} : vector<8x192xf32> to vector<8x128xf32>
    %193 = arith.addf %191, %192 : vector<8x128xf32>
    %194 = arith.negf %193 : vector<8x128xf32>
    %195 = math.exp %194 : vector<8x128xf32>
    %cst_96 = arith.constant 1.000000e+00 : f32
    %196 = vector.broadcast %cst_96 : f32 to vector<8x128xf32>
    %197 = arith.addf %196, %195 : vector<8x128xf32>
    %198 = arith.divf %196, %197 : vector<8x128xf32>
    %199 = vector.extract_strided_slice %198 {offsets = [0, 0], sizes = [8, 64], strides = [1, 1]} : vector<8x128xf32> to vector<8x64xf32>
    %200 = vector.extract_strided_slice %198 {offsets = [0, 64], sizes = [8, 64], strides = [1, 1]} : vector<8x128xf32> to vector<8x64xf32>
    %201 = vector.extract_strided_slice %190 {offsets = [0, 128], sizes = [8, 64], strides = [1, 1]} : vector<8x192xf32> to vector<8x64xf32>
    %c0_97 = arith.constant 0 : index
    %c0_98 = arith.constant 0 : index
    %202 = vector.load %arg6[%c0_97, %c0_98] : memref<8x64xf32, #tpu.memory_space<vmem>>, vector<8x64xf32>
    %203 = arith.addf %201, %202 : vector<8x64xf32>
    %204 = vector.extract_strided_slice %188 {offsets = [0, 128], sizes = [8, 64], strides = [1, 1]} : vector<8x192xf32> to vector<8x64xf32>
    %205 = arith.mulf %199, %203 : vector<8x64xf32>
    %206 = arith.addf %204, %205 : vector<8x64xf32>
    %207 = math.tanh %206 : vector<8x64xf32>
    %208 = arith.subf %185, %207 : vector<8x64xf32>
    %209 = arith.mulf %200, %208 : vector<8x64xf32>
    %210 = arith.addf %207, %209 : vector<8x64xf32>
    %c56_99 = arith.constant 56 : index
    %c0_100 = arith.constant 0 : index
    %211 = vector.load %arg16[%c56_99, %c0_100] : memref<64x64xf32, #tpu.memory_space<vmem>>, vector<8x64xf32>
    tpu.vector_store %arg16[%c56_99, %c0_100], %210 {strides = array<i32>} : memref<64x64xf32, #tpu.memory_space<vmem>>, vector<8x64xf32>,
    %c0_101 = arith.constant 0 : index
    %c0_102 = arith.constant 0 : index
    %212 = vector.load %arg17[%c0_101, %c0_102] : memref<64x64xf32, #tpu.memory_space<vmem>>, vector<8x64xf32>
    tpu.vector_store %arg17[%c0_101, %c0_102], %210 {strides = array<i32>} : memref<64x64xf32, #tpu.memory_space<vmem>>, vector<8x64xf32>,
    %c0_103 = arith.constant 0 : index
    %c0_104 = arith.constant 0 : index
    %213 = vector.load %arg16[%c0_103, %c0_104] : memref<64x64xf32, #tpu.memory_space<vmem>>, vector<64x64xf32>
    %c0_105 = arith.constant 0 : index
    %c0_106 = arith.constant 0 : index
    %214 = vector.load %arg17[%c0_105, %c0_106] : memref<64x64xf32, #tpu.memory_space<vmem>>, vector<64x64xf32>
    %c0_107 = arith.constant 0 : index
    %c0_108 = arith.constant 0 : index
    %215 = vector.load %arg7[%c0_107, %c0_108] : memref<64x192xf32, #tpu.memory_space<vmem>>, vector<64x192xf32>
    %cst_109 = arith.constant dense<0.000000e+00> : vector<64x192xf32>
    %216 = tpu.matmul %213, %215, %cst_109 {dimension_numbers = #tpu.dot_dimension_numbers<[1], [0], [0], [1], [0, 0, 1, 1], [], []>} : vector<64x64xf32>, vector<64x192xf32>, vector<64x192xf32> -> vector<64x192xf32>
    %c0_110 = arith.constant 0 : index
    %c0_111 = arith.constant 0 : index
    %217 = vector.load %arg8[%c0_110, %c0_111] : memref<64x192xf32, #tpu.memory_space<vmem>>, vector<64x192xf32>
    %cst_112 = arith.constant dense<0.000000e+00> : vector<64x192xf32>
    %218 = tpu.matmul %214, %217, %cst_112 {dimension_numbers = #tpu.dot_dimension_numbers<[1], [0], [0], [1], [0, 0, 1, 1], [], []>} : vector<64x64xf32>, vector<64x192xf32>, vector<64x192xf32> -> vector<64x192xf32>
    %219 = arith.addf %216, %218 : vector<64x192xf32>
    %c0_113 = arith.constant 0 : index
    %c0_114 = arith.constant 0 : index
    %220 = vector.load %arg9[%c0_113, %c0_114] : memref<1x192xf32, #tpu.memory_space<vmem>>, vector<1x192xf32>
    %221 = vector.broadcast %220 : vector<1x192xf32> to vector<64x192xf32>
    %222 = arith.addf %219, %221 : vector<64x192xf32>
    %c0_115 = arith.constant 0 : index
    %c0_116 = arith.constant 0 : index
    %223 = vector.load %arg15[%c0_115, %c0_116] : memref<64x192xf32, #tpu.memory_space<vmem>>, vector<64x192xf32>
    tpu.vector_store %arg15[%c0_115, %c0_116], %222 {strides = array<i32>} : memref<64x192xf32, #tpu.memory_space<vmem>>, vector<64x192xf32>,
    %cst_117 = arith.constant 0.000000e+00 : f32
    %224 = vector.broadcast %cst_117 : f32 to vector<8x64xf32>
    %c0_118 = arith.constant 0 : index
    %c0_119 = arith.constant 0 : index
    %225 = vector.load %arg15[%c0_118, %c0_119] : memref<64x192xf32, #tpu.memory_space<vmem>>, vector<8x192xf32>
    %c0_120 = arith.constant 0 : index
    %c0_121 = arith.constant 0 : index
    %226 = vector.load %arg10[%c0_120, %c0_121] : memref<64x192xf32, #tpu.memory_space<vmem>>, vector<64x192xf32>
    %cst_122 = arith.constant dense<0.000000e+00> : vector<8x192xf32>
    %227 = tpu.matmul %224, %226, %cst_122 {dimension_numbers = #tpu.dot_dimension_numbers<[1], [0], [0], [1], [0, 0, 1, 1], [], []>} : vector<8x64xf32>, vector<64x192xf32>, vector<8x192xf32> -> vector<8x192xf32>
    %228 = vector.extract_strided_slice %225 {offsets = [0, 0], sizes = [8, 128], strides = [1, 1]} : vector<8x192xf32> to vector<8x128xf32>
    %229 = vector.extract_strided_slice %227 {offsets = [0, 0], sizes = [8, 128], strides = [1, 1]} : vector<8x192xf32> to vector<8x128xf32>
    %230 = arith.addf %228, %229 : vector<8x128xf32>
    %231 = arith.negf %230 : vector<8x128xf32>
    %232 = math.exp %231 : vector<8x128xf32>
    %cst_123 = arith.constant 1.000000e+00 : f32
    %233 = vector.broadcast %cst_123 : f32 to vector<8x128xf32>
    %234 = arith.addf %233, %232 : vector<8x128xf32>
    %235 = arith.divf %233, %234 : vector<8x128xf32>
    %236 = vector.extract_strided_slice %235 {offsets = [0, 0], sizes = [8, 64], strides = [1, 1]} : vector<8x128xf32> to vector<8x64xf32>
    %237 = vector.extract_strided_slice %235 {offsets = [0, 64], sizes = [8, 64], strides = [1, 1]} : vector<8x128xf32> to vector<8x64xf32>
    %238 = vector.extract_strided_slice %227 {offsets = [0, 128], sizes = [8, 64], strides = [1, 1]} : vector<8x192xf32> to vector<8x64xf32>
    %c0_124 = arith.constant 0 : index
    %c0_125 = arith.constant 0 : index
    %239 = vector.load %arg11[%c0_124, %c0_125] : memref<8x64xf32, #tpu.memory_space<vmem>>, vector<8x64xf32>
    %240 = arith.addf %238, %239 : vector<8x64xf32>
    %241 = vector.extract_strided_slice %225 {offsets = [0, 128], sizes = [8, 64], strides = [1, 1]} : vector<8x192xf32> to vector<8x64xf32>
    %242 = arith.mulf %236, %240 : vector<8x64xf32>
    %243 = arith.addf %241, %242 : vector<8x64xf32>
    %244 = math.tanh %243 : vector<8x64xf32>
    %245 = arith.subf %224, %244 : vector<8x64xf32>
    %246 = arith.mulf %237, %245 : vector<8x64xf32>
    %247 = arith.addf %244, %246 : vector<8x64xf32>
    %c0_126 = arith.constant 0 : index
    %c0_127 = arith.constant 0 : index
    %248 = vector.load %arg12[%c0_126, %c0_127] : memref<64x64xf32, #tpu.memory_space<vmem>>, vector<8x64xf32>
    %249 = arith.mulf %247, %248 : vector<8x64xf32>
    %250 = arith.addf %0, %249 : vector<8x64xf32>
    %c8_128 = arith.constant 8 : index
    %c0_129 = arith.constant 0 : index
    %251 = vector.load %arg15[%c8_128, %c0_129] : memref<64x192xf32, #tpu.memory_space<vmem>>, vector<8x192xf32>
    %c0_130 = arith.constant 0 : index
    %c0_131 = arith.constant 0 : index
    %252 = vector.load %arg10[%c0_130, %c0_131] : memref<64x192xf32, #tpu.memory_space<vmem>>, vector<64x192xf32>
    %cst_132 = arith.constant dense<0.000000e+00> : vector<8x192xf32>
    %253 = tpu.matmul %247, %252, %cst_132 {dimension_numbers = #tpu.dot_dimension_numbers<[1], [0], [0], [1], [0, 0, 1, 1], [], []>} : vector<8x64xf32>, vector<64x192xf32>, vector<8x192xf32> -> vector<8x192xf32>
    %254 = vector.extract_strided_slice %251 {offsets = [0, 0], sizes = [8, 128], strides = [1, 1]} : vector<8x192xf32> to vector<8x128xf32>
    %255 = vector.extract_strided_slice %253 {offsets = [0, 0], sizes = [8, 128], strides = [1, 1]} : vector<8x192xf32> to vector<8x128xf32>
    %256 = arith.addf %254, %255 : vector<8x128xf32>
    %257 = arith.negf %256 : vector<8x128xf32>
    %258 = math.exp %257 : vector<8x128xf32>
    %cst_133 = arith.constant 1.000000e+00 : f32
    %259 = vector.broadcast %cst_133 : f32 to vector<8x128xf32>
    %260 = arith.addf %259, %258 : vector<8x128xf32>
    %261 = arith.divf %259, %260 : vector<8x128xf32>
    %262 = vector.extract_strided_slice %261 {offsets = [0, 0], sizes = [8, 64], strides = [1, 1]} : vector<8x128xf32> to vector<8x64xf32>
    %263 = vector.extract_strided_slice %261 {offsets = [0, 64], sizes = [8, 64], strides = [1, 1]} : vector<8x128xf32> to vector<8x64xf32>
    %264 = vector.extract_strided_slice %253 {offsets = [0, 128], sizes = [8, 64], strides = [1, 1]} : vector<8x192xf32> to vector<8x64xf32>
    %c0_134 = arith.constant 0 : index
    %c0_135 = arith.constant 0 : index
    %265 = vector.load %arg11[%c0_134, %c0_135] : memref<8x64xf32, #tpu.memory_space<vmem>>, vector<8x64xf32>
    %266 = arith.addf %264, %265 : vector<8x64xf32>
    %267 = vector.extract_strided_slice %251 {offsets = [0, 128], sizes = [8, 64], strides = [1, 1]} : vector<8x192xf32> to vector<8x64xf32>
    %268 = arith.mulf %262, %266 : vector<8x64xf32>
    %269 = arith.addf %267, %268 : vector<8x64xf32>
    %270 = math.tanh %269 : vector<8x64xf32>
    %271 = arith.subf %247, %270 : vector<8x64xf32>
    %272 = arith.mulf %263, %271 : vector<8x64xf32>
    %273 = arith.addf %270, %272 : vector<8x64xf32>
    %c8_136 = arith.constant 8 : index
    %c0_137 = arith.constant 0 : index
    %274 = vector.load %arg12[%c8_136, %c0_137] : memref<64x64xf32, #tpu.memory_space<vmem>>, vector<8x64xf32>
    %275 = arith.mulf %273, %274 : vector<8x64xf32>
    %276 = arith.addf %250, %275 : vector<8x64xf32>
    %c16_138 = arith.constant 16 : index
    %c0_139 = arith.constant 0 : index
    %277 = vector.load %arg15[%c16_138, %c0_139] : memref<64x192xf32, #tpu.memory_space<vmem>>, vector<8x192xf32>
    %c0_140 = arith.constant 0 : index
    %c0_141 = arith.constant 0 : index
    %278 = vector.load %arg10[%c0_140, %c0_141] : memref<64x192xf32, #tpu.memory_space<vmem>>, vector<64x192xf32>
    %cst_142 = arith.constant dense<0.000000e+00> : vector<8x192xf32>
    %279 = tpu.matmul %273, %278, %cst_142 {dimension_numbers = #tpu.dot_dimension_numbers<[1], [0], [0], [1], [0, 0, 1, 1], [], []>} : vector<8x64xf32>, vector<64x192xf32>, vector<8x192xf32> -> vector<8x192xf32>
    %280 = vector.extract_strided_slice %277 {offsets = [0, 0], sizes = [8, 128], strides = [1, 1]} : vector<8x192xf32> to vector<8x128xf32>
    %281 = vector.extract_strided_slice %279 {offsets = [0, 0], sizes = [8, 128], strides = [1, 1]} : vector<8x192xf32> to vector<8x128xf32>
    %282 = arith.addf %280, %281 : vector<8x128xf32>
    %283 = arith.negf %282 : vector<8x128xf32>
    %284 = math.exp %283 : vector<8x128xf32>
    %cst_143 = arith.constant 1.000000e+00 : f32
    %285 = vector.broadcast %cst_143 : f32 to vector<8x128xf32>
    %286 = arith.addf %285, %284 : vector<8x128xf32>
    %287 = arith.divf %285, %286 : vector<8x128xf32>
    %288 = vector.extract_strided_slice %287 {offsets = [0, 0], sizes = [8, 64], strides = [1, 1]} : vector<8x128xf32> to vector<8x64xf32>
    %289 = vector.extract_strided_slice %287 {offsets = [0, 64], sizes = [8, 64], strides = [1, 1]} : vector<8x128xf32> to vector<8x64xf32>
    %290 = vector.extract_strided_slice %279 {offsets = [0, 128], sizes = [8, 64], strides = [1, 1]} : vector<8x192xf32> to vector<8x64xf32>
    %c0_144 = arith.constant 0 : index
    %c0_145 = arith.constant 0 : index
    %291 = vector.load %arg11[%c0_144, %c0_145] : memref<8x64xf32, #tpu.memory_space<vmem>>, vector<8x64xf32>
    %292 = arith.addf %290, %291 : vector<8x64xf32>
    %293 = vector.extract_strided_slice %277 {offsets = [0, 128], sizes = [8, 64], strides = [1, 1]} : vector<8x192xf32> to vector<8x64xf32>
    %294 = arith.mulf %288, %292 : vector<8x64xf32>
    %295 = arith.addf %293, %294 : vector<8x64xf32>
    %296 = math.tanh %295 : vector<8x64xf32>
    %297 = arith.subf %273, %296 : vector<8x64xf32>
    %298 = arith.mulf %289, %297 : vector<8x64xf32>
    %299 = arith.addf %296, %298 : vector<8x64xf32>
    %c16_146 = arith.constant 16 : index
    %c0_147 = arith.constant 0 : index
    %300 = vector.load %arg12[%c16_146, %c0_147] : memref<64x64xf32, #tpu.memory_space<vmem>>, vector<8x64xf32>
    %301 = arith.mulf %299, %300 : vector<8x64xf32>
    %302 = arith.addf %276, %301 : vector<8x64xf32>
    %c24_148 = arith.constant 24 : index
    %c0_149 = arith.constant 0 : index
    %303 = vector.load %arg15[%c24_148, %c0_149] : memref<64x192xf32, #tpu.memory_space<vmem>>, vector<8x192xf32>
    %c0_150 = arith.constant 0 : index
    %c0_151 = arith.constant 0 : index
    %304 = vector.load %arg10[%c0_150, %c0_151] : memref<64x192xf32, #tpu.memory_space<vmem>>, vector<64x192xf32>
    %cst_152 = arith.constant dense<0.000000e+00> : vector<8x192xf32>
    %305 = tpu.matmul %299, %304, %cst_152 {dimension_numbers = #tpu.dot_dimension_numbers<[1], [0], [0], [1], [0, 0, 1, 1], [], []>} : vector<8x64xf32>, vector<64x192xf32>, vector<8x192xf32> -> vector<8x192xf32>
    %306 = vector.extract_strided_slice %303 {offsets = [0, 0], sizes = [8, 128], strides = [1, 1]} : vector<8x192xf32> to vector<8x128xf32>
    %307 = vector.extract_strided_slice %305 {offsets = [0, 0], sizes = [8, 128], strides = [1, 1]} : vector<8x192xf32> to vector<8x128xf32>
    %308 = arith.addf %306, %307 : vector<8x128xf32>
    %309 = arith.negf %308 : vector<8x128xf32>
    %310 = math.exp %309 : vector<8x128xf32>
    %cst_153 = arith.constant 1.000000e+00 : f32
    %311 = vector.broadcast %cst_153 : f32 to vector<8x128xf32>
    %312 = arith.addf %311, %310 : vector<8x128xf32>
    %313 = arith.divf %311, %312 : vector<8x128xf32>
    %314 = vector.extract_strided_slice %313 {offsets = [0, 0], sizes = [8, 64], strides = [1, 1]} : vector<8x128xf32> to vector<8x64xf32>
    %315 = vector.extract_strided_slice %313 {offsets = [0, 64], sizes = [8, 64], strides = [1, 1]} : vector<8x128xf32> to vector<8x64xf32>
    %316 = vector.extract_strided_slice %305 {offsets = [0, 128], sizes = [8, 64], strides = [1, 1]} : vector<8x192xf32> to vector<8x64xf32>
    %c0_154 = arith.constant 0 : index
    %c0_155 = arith.constant 0 : index
    %317 = vector.load %arg11[%c0_154, %c0_155] : memref<8x64xf32, #tpu.memory_space<vmem>>, vector<8x64xf32>
    %318 = arith.addf %316, %317 : vector<8x64xf32>
    %319 = vector.extract_strided_slice %303 {offsets = [0, 128], sizes = [8, 64], strides = [1, 1]} : vector<8x192xf32> to vector<8x64xf32>
    %320 = arith.mulf %314, %318 : vector<8x64xf32>
    %321 = arith.addf %319, %320 : vector<8x64xf32>
    %322 = math.tanh %321 : vector<8x64xf32>
    %323 = arith.subf %299, %322 : vector<8x64xf32>
    %324 = arith.mulf %315, %323 : vector<8x64xf32>
    %325 = arith.addf %322, %324 : vector<8x64xf32>
    %c24_156 = arith.constant 24 : index
    %c0_157 = arith.constant 0 : index
    %326 = vector.load %arg12[%c24_156, %c0_157] : memref<64x64xf32, #tpu.memory_space<vmem>>, vector<8x64xf32>
    %327 = arith.mulf %325, %326 : vector<8x64xf32>
    %328 = arith.addf %302, %327 : vector<8x64xf32>
    %c32_158 = arith.constant 32 : index
    %c0_159 = arith.constant 0 : index
    %329 = vector.load %arg15[%c32_158, %c0_159] : memref<64x192xf32, #tpu.memory_space<vmem>>, vector<8x192xf32>
    %c0_160 = arith.constant 0 : index
    %c0_161 = arith.constant 0 : index
    %330 = vector.load %arg10[%c0_160, %c0_161] : memref<64x192xf32, #tpu.memory_space<vmem>>, vector<64x192xf32>
    %cst_162 = arith.constant dense<0.000000e+00> : vector<8x192xf32>
    %331 = tpu.matmul %325, %330, %cst_162 {dimension_numbers = #tpu.dot_dimension_numbers<[1], [0], [0], [1], [0, 0, 1, 1], [], []>} : vector<8x64xf32>, vector<64x192xf32>, vector<8x192xf32> -> vector<8x192xf32>
    %332 = vector.extract_strided_slice %329 {offsets = [0, 0], sizes = [8, 128], strides = [1, 1]} : vector<8x192xf32> to vector<8x128xf32>
    %333 = vector.extract_strided_slice %331 {offsets = [0, 0], sizes = [8, 128], strides = [1, 1]} : vector<8x192xf32> to vector<8x128xf32>
    %334 = arith.addf %332, %333 : vector<8x128xf32>
    %335 = arith.negf %334 : vector<8x128xf32>
    %336 = math.exp %335 : vector<8x128xf32>
    %cst_163 = arith.constant 1.000000e+00 : f32
    %337 = vector.broadcast %cst_163 : f32 to vector<8x128xf32>
    %338 = arith.addf %337, %336 : vector<8x128xf32>
    %339 = arith.divf %337, %338 : vector<8x128xf32>
    %340 = vector.extract_strided_slice %339 {offsets = [0, 0], sizes = [8, 64], strides = [1, 1]} : vector<8x128xf32> to vector<8x64xf32>
    %341 = vector.extract_strided_slice %339 {offsets = [0, 64], sizes = [8, 64], strides = [1, 1]} : vector<8x128xf32> to vector<8x64xf32>
    %342 = vector.extract_strided_slice %331 {offsets = [0, 128], sizes = [8, 64], strides = [1, 1]} : vector<8x192xf32> to vector<8x64xf32>
    %c0_164 = arith.constant 0 : index
    %c0_165 = arith.constant 0 : index
    %343 = vector.load %arg11[%c0_164, %c0_165] : memref<8x64xf32, #tpu.memory_space<vmem>>, vector<8x64xf32>
    %344 = arith.addf %342, %343 : vector<8x64xf32>
    %345 = vector.extract_strided_slice %329 {offsets = [0, 128], sizes = [8, 64], strides = [1, 1]} : vector<8x192xf32> to vector<8x64xf32>
    %346 = arith.mulf %340, %344 : vector<8x64xf32>
    %347 = arith.addf %345, %346 : vector<8x64xf32>
    %348 = math.tanh %347 : vector<8x64xf32>
    %349 = arith.subf %325, %348 : vector<8x64xf32>
    %350 = arith.mulf %341, %349 : vector<8x64xf32>
    %351 = arith.addf %348, %350 : vector<8x64xf32>
    %c32_166 = arith.constant 32 : index
    %c0_167 = arith.constant 0 : index
    %352 = vector.load %arg12[%c32_166, %c0_167] : memref<64x64xf32, #tpu.memory_space<vmem>>, vector<8x64xf32>
    %353 = arith.mulf %351, %352 : vector<8x64xf32>
    %354 = arith.addf %328, %353 : vector<8x64xf32>
    %c40_168 = arith.constant 40 : index
    %c0_169 = arith.constant 0 : index
    %355 = vector.load %arg15[%c40_168, %c0_169] : memref<64x192xf32, #tpu.memory_space<vmem>>, vector<8x192xf32>
    %c0_170 = arith.constant 0 : index
    %c0_171 = arith.constant 0 : index
    %356 = vector.load %arg10[%c0_170, %c0_171] : memref<64x192xf32, #tpu.memory_space<vmem>>, vector<64x192xf32>
    %cst_172 = arith.constant dense<0.000000e+00> : vector<8x192xf32>
    %357 = tpu.matmul %351, %356, %cst_172 {dimension_numbers = #tpu.dot_dimension_numbers<[1], [0], [0], [1], [0, 0, 1, 1], [], []>} : vector<8x64xf32>, vector<64x192xf32>, vector<8x192xf32> -> vector<8x192xf32>
    %358 = vector.extract_strided_slice %355 {offsets = [0, 0], sizes = [8, 128], strides = [1, 1]} : vector<8x192xf32> to vector<8x128xf32>
    %359 = vector.extract_strided_slice %357 {offsets = [0, 0], sizes = [8, 128], strides = [1, 1]} : vector<8x192xf32> to vector<8x128xf32>
    %360 = arith.addf %358, %359 : vector<8x128xf32>
    %361 = arith.negf %360 : vector<8x128xf32>
    %362 = math.exp %361 : vector<8x128xf32>
    %cst_173 = arith.constant 1.000000e+00 : f32
    %363 = vector.broadcast %cst_173 : f32 to vector<8x128xf32>
    %364 = arith.addf %363, %362 : vector<8x128xf32>
    %365 = arith.divf %363, %364 : vector<8x128xf32>
    %366 = vector.extract_strided_slice %365 {offsets = [0, 0], sizes = [8, 64], strides = [1, 1]} : vector<8x128xf32> to vector<8x64xf32>
    %367 = vector.extract_strided_slice %365 {offsets = [0, 64], sizes = [8, 64], strides = [1, 1]} : vector<8x128xf32> to vector<8x64xf32>
    %368 = vector.extract_strided_slice %357 {offsets = [0, 128], sizes = [8, 64], strides = [1, 1]} : vector<8x192xf32> to vector<8x64xf32>
    %c0_174 = arith.constant 0 : index
    %c0_175 = arith.constant 0 : index
    %369 = vector.load %arg11[%c0_174, %c0_175] : memref<8x64xf32, #tpu.memory_space<vmem>>, vector<8x64xf32>
    %370 = arith.addf %368, %369 : vector<8x64xf32>
    %371 = vector.extract_strided_slice %355 {offsets = [0, 128], sizes = [8, 64], strides = [1, 1]} : vector<8x192xf32> to vector<8x64xf32>
    %372 = arith.mulf %366, %370 : vector<8x64xf32>
    %373 = arith.addf %371, %372 : vector<8x64xf32>
    %374 = math.tanh %373 : vector<8x64xf32>
    %375 = arith.subf %351, %374 : vector<8x64xf32>
    %376 = arith.mulf %367, %375 : vector<8x64xf32>
    %377 = arith.addf %374, %376 : vector<8x64xf32>
    %c40_176 = arith.constant 40 : index
    %c0_177 = arith.constant 0 : index
    %378 = vector.load %arg12[%c40_176, %c0_177] : memref<64x64xf32, #tpu.memory_space<vmem>>, vector<8x64xf32>
    %379 = arith.mulf %377, %378 : vector<8x64xf32>
    %380 = arith.addf %354, %379 : vector<8x64xf32>
    %c48_178 = arith.constant 48 : index
    %c0_179 = arith.constant 0 : index
    %381 = vector.load %arg15[%c48_178, %c0_179] : memref<64x192xf32, #tpu.memory_space<vmem>>, vector<8x192xf32>
    %c0_180 = arith.constant 0 : index
    %c0_181 = arith.constant 0 : index
    %382 = vector.load %arg10[%c0_180, %c0_181] : memref<64x192xf32, #tpu.memory_space<vmem>>, vector<64x192xf32>
    %cst_182 = arith.constant dense<0.000000e+00> : vector<8x192xf32>
    %383 = tpu.matmul %377, %382, %cst_182 {dimension_numbers = #tpu.dot_dimension_numbers<[1], [0], [0], [1], [0, 0, 1, 1], [], []>} : vector<8x64xf32>, vector<64x192xf32>, vector<8x192xf32> -> vector<8x192xf32>
    %384 = vector.extract_strided_slice %381 {offsets = [0, 0], sizes = [8, 128], strides = [1, 1]} : vector<8x192xf32> to vector<8x128xf32>
    %385 = vector.extract_strided_slice %383 {offsets = [0, 0], sizes = [8, 128], strides = [1, 1]} : vector<8x192xf32> to vector<8x128xf32>
    %386 = arith.addf %384, %385 : vector<8x128xf32>
    %387 = arith.negf %386 : vector<8x128xf32>
    %388 = math.exp %387 : vector<8x128xf32>
    %cst_183 = arith.constant 1.000000e+00 : f32
    %389 = vector.broadcast %cst_183 : f32 to vector<8x128xf32>
    %390 = arith.addf %389, %388 : vector<8x128xf32>
    %391 = arith.divf %389, %390 : vector<8x128xf32>
    %392 = vector.extract_strided_slice %391 {offsets = [0, 0], sizes = [8, 64], strides = [1, 1]} : vector<8x128xf32> to vector<8x64xf32>
    %393 = vector.extract_strided_slice %391 {offsets = [0, 64], sizes = [8, 64], strides = [1, 1]} : vector<8x128xf32> to vector<8x64xf32>
    %394 = vector.extract_strided_slice %383 {offsets = [0, 128], sizes = [8, 64], strides = [1, 1]} : vector<8x192xf32> to vector<8x64xf32>
    %c0_184 = arith.constant 0 : index
    %c0_185 = arith.constant 0 : index
    %395 = vector.load %arg11[%c0_184, %c0_185] : memref<8x64xf32, #tpu.memory_space<vmem>>, vector<8x64xf32>
    %396 = arith.addf %394, %395 : vector<8x64xf32>
    %397 = vector.extract_strided_slice %381 {offsets = [0, 128], sizes = [8, 64], strides = [1, 1]} : vector<8x192xf32> to vector<8x64xf32>
    %398 = arith.mulf %392, %396 : vector<8x64xf32>
    %399 = arith.addf %397, %398 : vector<8x64xf32>
    %400 = math.tanh %399 : vector<8x64xf32>
    %401 = arith.subf %377, %400 : vector<8x64xf32>
    %402 = arith.mulf %393, %401 : vector<8x64xf32>
    %403 = arith.addf %400, %402 : vector<8x64xf32>
    %c48_186 = arith.constant 48 : index
    %c0_187 = arith.constant 0 : index
    %404 = vector.load %arg12[%c48_186, %c0_187] : memref<64x64xf32, #tpu.memory_space<vmem>>, vector<8x64xf32>
    %405 = arith.mulf %403, %404 : vector<8x64xf32>
    %406 = arith.addf %380, %405 : vector<8x64xf32>
    %c56_188 = arith.constant 56 : index
    %c0_189 = arith.constant 0 : index
    %407 = vector.load %arg15[%c56_188, %c0_189] : memref<64x192xf32, #tpu.memory_space<vmem>>, vector<8x192xf32>
    %c0_190 = arith.constant 0 : index
    %c0_191 = arith.constant 0 : index
    %408 = vector.load %arg10[%c0_190, %c0_191] : memref<64x192xf32, #tpu.memory_space<vmem>>, vector<64x192xf32>
    %cst_192 = arith.constant dense<0.000000e+00> : vector<8x192xf32>
    %409 = tpu.matmul %403, %408, %cst_192 {dimension_numbers = #tpu.dot_dimension_numbers<[1], [0], [0], [1], [0, 0, 1, 1], [], []>} : vector<8x64xf32>, vector<64x192xf32>, vector<8x192xf32> -> vector<8x192xf32>
    %410 = vector.extract_strided_slice %407 {offsets = [0, 0], sizes = [8, 128], strides = [1, 1]} : vector<8x192xf32> to vector<8x128xf32>
    %411 = vector.extract_strided_slice %409 {offsets = [0, 0], sizes = [8, 128], strides = [1, 1]} : vector<8x192xf32> to vector<8x128xf32>
    %412 = arith.addf %410, %411 : vector<8x128xf32>
    %413 = arith.negf %412 : vector<8x128xf32>
    %414 = math.exp %413 : vector<8x128xf32>
    %cst_193 = arith.constant 1.000000e+00 : f32
    %415 = vector.broadcast %cst_193 : f32 to vector<8x128xf32>
    %416 = arith.addf %415, %414 : vector<8x128xf32>
    %417 = arith.divf %415, %416 : vector<8x128xf32>
    %418 = vector.extract_strided_slice %417 {offsets = [0, 0], sizes = [8, 64], strides = [1, 1]} : vector<8x128xf32> to vector<8x64xf32>
    %419 = vector.extract_strided_slice %417 {offsets = [0, 64], sizes = [8, 64], strides = [1, 1]} : vector<8x128xf32> to vector<8x64xf32>
    %420 = vector.extract_strided_slice %409 {offsets = [0, 128], sizes = [8, 64], strides = [1, 1]} : vector<8x192xf32> to vector<8x64xf32>
    %c0_194 = arith.constant 0 : index
    %c0_195 = arith.constant 0 : index
    %421 = vector.load %arg11[%c0_194, %c0_195] : memref<8x64xf32, #tpu.memory_space<vmem>>, vector<8x64xf32>
    %422 = arith.addf %420, %421 : vector<8x64xf32>
    %423 = vector.extract_strided_slice %407 {offsets = [0, 128], sizes = [8, 64], strides = [1, 1]} : vector<8x192xf32> to vector<8x64xf32>
    %424 = arith.mulf %418, %422 : vector<8x64xf32>
    %425 = arith.addf %423, %424 : vector<8x64xf32>
    %426 = math.tanh %425 : vector<8x64xf32>
    %427 = arith.subf %403, %426 : vector<8x64xf32>
    %428 = arith.mulf %419, %427 : vector<8x64xf32>
    %429 = arith.addf %426, %428 : vector<8x64xf32>
    %c56_196 = arith.constant 56 : index
    %c0_197 = arith.constant 0 : index
    %430 = vector.load %arg12[%c56_196, %c0_197] : memref<64x64xf32, #tpu.memory_space<vmem>>, vector<8x64xf32>
    %431 = arith.mulf %429, %430 : vector<8x64xf32>
    %432 = arith.addf %406, %431 : vector<8x64xf32>
    %cst_198 = arith.constant dense<0.000000e+00> : vector<8xf32>
    %433 = vector.multi_reduction <add>, %432, %cst_198 [1] : vector<8x64xf32> to vector<8xf32>
    %434 = vector.shape_cast %433 : vector<8xf32> to vector<8x1xf32>
    %c0_199 = arith.constant 0 : index
    %c0_200 = arith.constant 0 : index
    %435 = vector.load %arg13[%c0_199, %c0_200] : memref<1x1xf32, #tpu.memory_space<vmem>>, vector<1x1xf32>
    %436 = vector.broadcast %435 : vector<1x1xf32> to vector<8x1xf32>
    %437 = arith.addf %434, %436 : vector<8x1xf32>
    %438 = arith.negf %437 : vector<8x1xf32>
    %439 = math.exp %438 : vector<8x1xf32>
    %cst_201 = arith.constant 1.000000e+00 : f32
    %440 = vector.broadcast %cst_201 : f32 to vector<8x1xf32>
    %441 = arith.addf %440, %439 : vector<8x1xf32>
    %442 = arith.divf %440, %441 : vector<8x1xf32>
    %c0_202 = arith.constant 0 : index
    %c0_203 = arith.constant 0 : index
    %443 = vector.load %arg14[%c0_202, %c0_203] : memref<8x1xf32, #tpu.memory_space<vmem>>, vector<8x1xf32>
    tpu.vector_store %arg14[%c0_202, %c0_203], %442 {strides = array<i32>} : memref<8x1xf32, #tpu.memory_space<vmem>>, vector<8x1xf32>,
    return
  }
}

</mosaic_0001>

<bundles_post_ra>
// kernel: discriminator_forward.1
= control target key start
LH: loop header
LB: loop body
LE: loop exit
PB: predicated region body
PF: predicated region fallthrough
CT: control target
= control target key end

     0   :  { %s3838_s0 = inlined_call_operand.vmem [shape: f32[64,16], index: 0, kind: input, shape index: {}]   ;;  %s3839_s1 = inlined_call_operand.vmem [shape: f32[64,16], index: 1, kind: input, shape index: {}]   ;;  %s3840_s2 = inlined_call_operand.vmem [shape: f32[16,192], index: 2, kind: input, shape index: {}]   ;;  %s3841_s3 = inlined_call_operand.hbm [shape: f32[16,192], index: 3, kind: input, shape index: {}]   ;;  %s3842_s4 = inlined_call_operand.vmem [shape: f32[1,192], index: 4, kind: input, shape index: {}]   ;;  %s3843_s5 = inlined_call_operand.vmem [shape: f32[64,192], index: 5, kind: input, shape index: {}]   ;;  %s3844_s6 = inlined_call_operand.hbm [shape: f32[8,64], index: 6, kind: input, shape index: {}]   ;;  %s3845_s7 = inlined_call_operand.vmem [shape: f32[64,192], index: 7, kind: input, shape index: {}]   ;;  %s3846_s8 = inlined_call_operand.vmem [shape: f32[64,192], index: 8, kind: input, shape index: {}]   ;;  %s3847_s9 = inlined_call_operand.hbm [shape: f32[1,192], index: 9, kind: input, shape index: {}]   ;;  %s3848_s10 = inlined_call_operand.hbm [shape: f32[64,192], index: 10, kind: input, shape index: {}]   ;;  %s3849_s11 = inlined_call_operand.hbm [shape: f32[8,64], index: 11, kind: input, shape index: {}]   ;;  %s3850_s12 = inlined_call_operand.vmem [shape: f32[64,64], index: 12, kind: input, shape index: {}]   ;;  %s3851_s13 = inlined_call_operand.<no memory space> [shape: f32[1,1], index: 13, kind: input, shape index: {}]   ;;  %s3852_s14 = inlined_call_operand.vmem [shape: f32[8,1], index: 14, kind: output, shape index: {}]  }
   0x1   :  { %v19_v0 = vstv %s3851_s13 }
   0x2   :  { %20 = vst [vmem:[#allocation5] sm:$0x1] %v19_v0 }
   0x3   :  { %21 = vsyncpa [#allocation7], 0 }
   0x4   :  { %22 = vsyncpa [#allocation9], 0 }
   0x5   :  { %23 = vsyncpa [#allocation12], 0  ;;  %s2884_s15 = smov [#allocation8]  }
   0x6   :  { %s52_s16 = sshll.u32 %s2884_s15, 4  ;;  %s53_s16 = int_to_ptr.vmem [resolvable:$true] %s52_s16 }
   0x7   :  { %s2786_s17 = scalar_lea.vmem %s53_s16, 128  ;;  %p2791_p1 = scmp.lt.s32.totalorder %s53_s16, %s53_s16 }
   0x8   :  { %p2787_p0 = scmp.ne.s32.totalorder %s53_s16, %s2786_s17  ;;  %p2792_p2 = scmp.lt.s32.totalorder %s2786_s17, %s2786_s17 }
   0xa   :  { %p2793_p3 = por %p2792_p2, %p2791_p1 }
   0xc   :  { %p2794_p4 = pnand %p2793_p3, %p2787_p0 }
   0xe   :  { %2797 = shalt.err (!%p2794_p4)
}
   0xf   :  { %55 = dma.hbm_to_vmem [thread:$0]  %s3844_s6, 128, %s53_s16, [#allocation9]  }
  0x10   :  { %s2885_s20 = smov [#allocation11]   ;;  %s2886_s21 = smov [#allocation6]  }
  0x11   :  { %s75_s13 = sshll.u32 %s2885_s20, 4  ;;  %s35_s22 = sshll.u32 %s2886_s21, 4  ;;  %s76_s13 = int_to_ptr.vmem [resolvable:$true] %s75_s13  ;;  %s36_s22 = int_to_ptr.vmem [resolvable:$true] %s35_s22 }
  0x12   :  { %s2806_s23 = scalar_lea.vmem %s76_s13, 2048  ;;  %p2811_p6 = scmp.lt.s32.totalorder %s76_s13, %s76_s13 }
  0x13   :  { %p2807_p5 = scmp.ne.s32.totalorder %s76_s13, %s2806_s23  ;;  %p2812_p7 = scmp.lt.s32.totalorder %s2806_s23, %s2806_s23 }
  0x15   :  { %p2813_p8 = por %p2812_p7, %p2811_p6 }
  0x17   :  { %p2814_p9 = pnand %p2813_p8, %p2807_p5 }
  0x19   :  { %2817 = shalt.err (!%p2814_p9)
}
  0x1a   :  { %s2887_s24 = smov 256   ;;  %s2888_s25 = smov 16  }
  0x1b   :  { %81 = dma.hbm_to_vmem [thread:$0]  %s3848_s10, 2048, %s76_s13, [#allocation12], %s2887_s24, %s2887_s24, %s2888_s25  }
  0x1c   :  { %s2826_s6 = scalar_lea.vmem %s36_s22, 512  ;;  %p2831_p11 = scmp.lt.s32.totalorder %s36_s22, %s36_s22 }
  0x1d   :  { %p2827_p10 = scmp.ne.s32.totalorder %s36_s22, %s2826_s6  ;;  %p2832_p12 = scmp.lt.s32.totalorder %s2826_s6, %s2826_s6 }
  0x1f   :  { %p2833_p13 = por %p2832_p12, %p2831_p11 }
  0x21   :  { %p2834_p0 = pnand %p2833_p13, %p2827_p10 }
  0x23   :  { %2837 = shalt.err (!%p2834_p0)
}
  0x24   :  { %41 = dma.hbm_to_vmem [thread:$0]  %s3841_s3, 512, %s36_s22, [#allocation7], %s2887_s24, %s2887_s24, %s2888_s25  }
  0x25   :  { %s2889_s30 = smov [#allocation10]   ;;  %s2890_s16 = smov [#allocation13]  }
  0x26   :  { %s66_s15 = sshll.u32 %s2889_s30, 4  ;;  %s88_s17 = sshll.u32 %s2890_s16, 4  ;;  %s67_s15 = int_to_ptr.vmem [resolvable:$true] %s66_s15  ;;  %s89_s17 = int_to_ptr.vmem [resolvable:$true] %s88_s17 }
  0x27   :  { %s2846_s18 = scalar_lea.vmem %s67_s15, 32  ;;  %p2851_p2 = scmp.lt.s32.totalorder %s67_s15, %s67_s15 }
  0x28   :  { %p2847_p1 = scmp.ne.s32.totalorder %s67_s15, %s2846_s18  ;;  %p2852_p3 = scmp.lt.s32.totalorder %s2846_s18, %s2846_s18 }
  0x2a   :  { %p2853_p4 = por %p2852_p3, %p2851_p2 }
  0x2c   :  { %p2854_p5 = pnand %p2853_p4, %p2847_p1 }
  0x2e   :  { %2857 = shalt.err (!%p2854_p5)
}
  0x2f   :  { %69 = dma.hbm_to_vmem [thread:$0]  %s3847_s9, 32, %s67_s15, [#allocation9]  }
  0x30   :  { %s2866_s20 = scalar_lea.vmem %s89_s17, 128  ;;  %p2871_p7 = scmp.lt.s32.totalorder %s89_s17, %s89_s17 }
  0x31   :  { %p2867_p6 = scmp.ne.s32.totalorder %s89_s17, %s2866_s20  ;;  %p2872_p8 = scmp.lt.s32.totalorder %s2866_s20, %s2866_s20 }
  0x33   :  { %p2873_p9 = por %p2872_p8, %p2871_p7 }
  0x35   :  { %p2874_p10 = pnand %p2873_p9, %p2867_p6 }
  0x37   :  { %2877 = shalt.err (!%p2874_p10)
}
  0x38   :  { %91 = dma.hbm_to_vmem [thread:$0]  %s3849_s11, 128, %s89_s17, [#allocation12]  }
  0x39   :  { %2878 = dma.done.wait [#allocation7], 512  }
  0x3a   :  { %2879 = vsyncadd [#allocation7], 4294966784 }
  0x3b   :  { %2880 = dma.done.wait [#allocation9], 160  }
  0x3c   :  { %2881 = vsyncadd [#allocation9], 4294967136 }
  0x3d   :  { %2882 = dma.done.wait [#allocation12], 2176  }
  0x3e   :  { %2883 = vsyncadd [#allocation12], 4294965120  ;;  %v2891_v1 = vmov 0.0   ;;  %v134_v2 = vld [vmem:[#allocation6 + $0x18] sm:$0xff]  ;;  %v133_v4 = vld [vmem:[#allocation6 + $0x10] sm:$0xff]  ;;  %vm135_vm0 = vcmask 130048   ;;  %v412_v42 = vlaneseq }
  0x3f   :  { %224 = vmatprep.mubr.f32.mxu0 %v2891_v1  ;;  %361 = vmatprep.mubr.f32.mxu1 %v2891_v1  ;;  %v130_v3 = vld [vmem:[%s3840_s2 + $0x18] sm:$0xff]  ;;  %v129_v5 = vld [vmem:[%s3840_s2 + $0x10] sm:$0xff]  ;;  %v128_v7 = vld [vmem:[%s3840_s2 + $0x8] sm:$0xff]  ;;  %vm439_vm1 = vcmask 523264   ;;  %vm2596_vm2 = vcmask 7168  }
  0x40   :  { %188 = vmatprep.subr.mxu0 %v134_v2  ;;  %325 = vmatprep.subr.mxu1 %v130_v3  ;;  %v132_v6 = vld [vmem:[#allocation6 + $0x8] sm:$0xff]  ;;  %v131_v8 = vld [vmem:[#allocation6] sm:$0xff]  ;;  %v3009_v12 = vld [vmem:[%s3843_s5 + $0x78] sm:$0xff]  ;;  %v3212_v43 = vshrl.u32 %v412_v42, 7 }
  0x41   :  { %189 = vmatpush1.msra.mxu0 %v133_v4  ;;  %326 = vmatpush1.msra.mxu1 %v129_v5  ;;  %v127_v9 = vld [vmem:[%s3840_s2] sm:$0xff]  ;;  %v3014_v13 = vld [vmem:[%s3843_s5 + $0x70] sm:$0xff]  ;;  %v3021_v14 = vld [vmem:[%s3843_s5 + $0x68] sm:$0xff] }
  0x42   :  { %v119_v10 = vld [vmem:[%s3839_s1] sm:$0xff]  ;;  %190 = vmatprep.subr.mxu0 %v132_v6  ;;  %327 = vmatprep.subr.mxu1 %v128_v7  ;;  %v120_v15 = vld [vmem:[%s3839_s1 + $0x8] sm:$0xff]  ;;  %v3042_v18 = vld [vmem:[%s3843_s5 + $0x58] sm:$0xff]  ;;  %v418_v44 = vsub.s32 1, %v3212_v43  ;;  %v414_v48 = vsub.s32 0, %v3212_v43 }
  0x43   :  { %v111_v11 = vld [vmem:[%s3838_s0] sm:$0xff]  ;;  %191 = vmatpush1.msra.mxu0 %v131_v8  ;;  %328 = vmatpush1.msra.mxu1 %v127_v9  ;;  %v112_v16 = vld [vmem:[%s3838_s0 + $0x8] sm:$0xff]  ;;  %v3050_v19 = vld [vmem:[%s3843_s5 + $0x50] sm:$0xff] }
  0x44   :  { %2605 = vmatmul.mubr.msk.f32.vlgmr.msra.gmra.mxu0 %vm135_vm0, %v119_v10  ;;  %2613 = vmatmul.mubr.msk.f32.vlgmr.msra.gmra.mxu1 %vm135_vm0, %v111_v11  ;;  %v3036_v17 = vld [vmem:[%s3843_s5 + $0x60] sm:$0xff]  ;;  %v121_v20 = vld [vmem:[%s3839_s1 + $0x10] sm:$0xff]  ;;  %v3066_v22 = vld [vmem:[%s3843_s5 + $0x48] sm:$0xff] }
  0x45   :  { %492 = vmatprep.subr.mxu0 %v3009_v12  ;;  %230 = vmatprep.mubr.f32.mxu0 %v2891_v1  ;;  %v113_v21 = vld [vmem:[%s3838_s0 + $0x10] sm:$0xff]  ;;  %v3074_v23 = vld [vmem:[%s3843_s5 + $0x40] sm:$0xff]  ;;  %v122_v24 = vld [vmem:[%s3839_s1 + $0x18] sm:$0xff] }
  0x46   :  { %493 = vmatpush1.msra.mxu0 %v3014_v13  ;;  %367 = vmatprep.mubr.f32.mxu1 %v2891_v1  ;;  %v114_v25 = vld [vmem:[%s3838_s0 + $0x18] sm:$0xff]  ;;  %v3098_v27 = vld [vmem:[%s3843_s5 + $0x30] sm:$0xff]  ;;  %v123_v28 = vld [vmem:[%s3839_s1 + $0x20] sm:$0xff] }
  0x47   :  { %494 = vmatprep.subr.mxu0 %v3021_v14  ;;  %609 = vmatprep.subr.mxu1 %v3009_v12  ;;  %v3090_v26 = vld [vmem:[%s3843_s5 + $0x38] sm:$0xff]  ;;  %v115_v29 = vld [vmem:[%s3838_s0 + $0x20] sm:$0xff]  ;;  %v3114_v30 = vld [vmem:[%s3843_s5 + $0x28] sm:$0xff] }
  0x48   :  { %2606 = vmatmul.mubr.msk.f32.gmra.mxu0 %vm135_vm0, %v120_v15  ;;  %2614 = vmatmul.mubr.msk.f32.gmra.mxu1 %vm135_vm0, %v112_v16  ;;  %v3122_v31 = vld [vmem:[%s3843_s5 + $0x20] sm:$0xff]  ;;  %v124_v32 = vld [vmem:[%s3839_s1 + $0x28] sm:$0xff]  ;;  %v3138_v34 = vld [vmem:[%s3843_s5 + $0x18] sm:$0xff] }
  0x49   :  { %495 = vmatpush1.msra.mxu0 %v3036_v17  ;;  %236 = vmatprep.mubr.f32.mxu0 %v2891_v1  ;;  %v116_v33 = vld [vmem:[%s3838_s0 + $0x28] sm:$0xff]  ;;  %v3146_v35 = vld [vmem:[%s3843_s5 + $0x10] sm:$0xff]  ;;  %v3170_v39 = vld [vmem:[%s3843_s5] sm:$0xff] }
  0x4a   :  { %373 = vmatprep.mubr.f32.mxu1 %v2891_v1  ;;  %496 = vmatprep.subr.mxu0 %v3042_v18  ;;  %v125_v36 = vld [vmem:[%s3839_s1 + $0x30] sm:$0xff]  ;;  %v3162_v38 = vld [vmem:[%s3843_s5 + $0x8] sm:$0xff]  ;;  %v126_v40 = vld [vmem:[%s3839_s1 + $0x38] sm:$0xff] }
  0x4b   :  { %497 = vmatpush1.msra.mxu0 %v3050_v19  ;;  %610 = vmatpush1.msra.mxu1 %v3014_v13  ;;  %v117_v37 = vld [vmem:[%s3838_s0 + $0x30] sm:$0xff]  ;;  %v118_v41 = vld [vmem:[%s3838_s0 + $0x38] sm:$0xff]  ;;  %v410_v47 = vld [vmem:[%s3842_s4] sm:$0x3]  ;;  %s2892_s4 = smov 64  }
  0x4c   :  { %2607 = vmatmul.mubr.msk.f32.gmra.mxu0 %vm135_vm0, %v121_v20  ;;  %2615 = vmatmul.mubr.msk.f32.gmra.mxu1 %vm135_vm0, %v113_v21  ;;  %v3221_v49 = vrot.slane %v410_v47, %v418_v44  ;;  %v415_v55 = vrot.slane %v410_v47, %v414_v48 }
  0x4d   :  { %242 = vmatprep.mubr.f32.mxu0 %v2891_v1  ;;  %379 = vmatprep.mubr.f32.mxu1 %v2891_v1 }
  0x4e   :  { %498 = vmatprep.subr.mxu0 %v3066_v22  ;;  %611 = vmatprep.subr.mxu1 %v3021_v14 }
  0x4f   :  { %499 = vmatpush1.msra.mxu0 %v3074_v23  ;;  %612 = vmatpush1.msra.mxu1 %v3036_v17 }
  0x50   :  { %2608 = vmatmul.mubr.msk.f32.gmra.mxu0 %vm135_vm0, %v122_v24  ;;  %2616 = vmatmul.mubr.msk.f32.gmra.mxu1 %vm135_vm0, %v114_v25 }
  0x51   :  { %248 = vmatprep.mubr.f32.mxu0 %v2891_v1  ;;  %385 = vmatprep.mubr.f32.mxu1 %v2891_v1 }
  0x52   :  { %500 = vmatprep.subr.mxu0 %v3090_v26  ;;  %613 = vmatprep.subr.mxu1 %v3042_v18 }
  0x53   :  { %501 = vmatpush1.msra.mxu0 %v3098_v27  ;;  %614 = vmatpush1.msra.mxu1 %v3050_v19 }
  0x54   :  { %2609 = vmatmul.mubr.msk.f32.gmra.mxu0 %vm135_vm0, %v123_v28  ;;  %2617 = vmatmul.mubr.msk.f32.gmra.mxu1 %vm135_vm0, %v115_v29 }
  0x55   :  { %254 = vmatprep.mubr.f32.mxu0 %v2891_v1  ;;  %391 = vmatprep.mubr.f32.mxu1 %v2891_v1 }
  0x56   :  { %502 = vmatprep.subr.mxu0 %v3114_v30  ;;  %615 = vmatprep.subr.mxu1 %v3066_v22 }
  0x57   :  { %503 = vmatpush1.msra.mxu0 %v3122_v31  ;;  %616 = vmatpush1.msra.mxu1 %v3074_v23 }
  0x58   :  { %2610 = vmatmul.mubr.msk.f32.gmra.mxu0 %vm135_vm0, %v124_v32  ;;  %2618 = vmatmul.mubr.msk.f32.gmra.mxu1 %vm135_vm0, %v116_v33 }
  0x59   :  { %260 = vmatprep.mubr.f32.mxu0 %v2891_v1  ;;  %397 = vmatprep.mubr.f32.mxu1 %v2891_v1 }
  0x5a   :  { %504 = vmatprep.subr.mxu0 %v3138_v34  ;;  %617 = vmatprep.subr.mxu1 %v3090_v26 }
  0x5b   :  { %505 = vmatpush1.msra.mxu0 %v3146_v35  ;;  %618 = vmatpush1.msra.mxu1 %v3098_v27 }
  0x5c   :  { %2611 = vmatmul.mubr.msk.f32.gmra.mxu0 %vm135_vm0, %v125_v36  ;;  %2619 = vmatmul.mubr.msk.f32.gmra.mxu1 %vm135_vm0, %v117_v37 }
  0x5d   :  { %266 = vmatprep.mubr.f32.mxu0 %v2891_v1  ;;  %403 = vmatprep.mubr.f32.mxu1 %v2891_v1 }
  0x5e   :  { %506 = vmatprep.subr.mxu0 %v3162_v38  ;;  %619 = vmatprep.subr.mxu1 %v3114_v30 }
  0x5f   :  { %507 = vmatpush1.msra.mxu0 %v3170_v39  ;;  %620 = vmatpush1.msra.mxu1 %v3122_v31 }
  0x60   :  { %2612 = vmatmul.mubr.msk.f32.gmra.mxu0 %vm135_vm0, %v126_v40  ;;  %2620 = vmatmul.mubr.msk.f32.gmra.mxu1 %vm135_vm0, %v118_v41 }
  0x61   :  { %540 = vmatprep.mubr.f32.mxu0 %v2891_v1  ;;  %621 = vmatprep.subr.mxu1 %v3138_v34 }
  0x62   :  { %622 = vmatpush1.msra.mxu1 %v3146_v35  ;;  %657 = vmatprep.mubr.f32.mxu1 %v2891_v1 }
  0x63   :  { %623 = vmatprep.subr.mxu1 %v3162_v38  ;;  %726 = vmatprep.subr.mxu0 %v3009_v12 }
  0x64   :  { %541 = vmatmul.mubr.f32.vlgmr.msra.gmra.mxu0 %v2891_v1  ;;  %624 = vmatpush1.msra.mxu1 %v3170_v39 }
  0x65   :  { %727 = vmatpush1.msra.mxu0 %v3014_v13  ;;  %774 = vmatprep.mubr.f32.mxu0 %v2891_v1 }
  0x66   :  { %728 = vmatprep.subr.mxu0 %v3021_v14  ;;  %843 = vmatprep.subr.mxu1 %v3009_v12 }
  0x67   :  { %729 = vmatpush1.msra.mxu0 %v3036_v17 }
  0x68   :  { %730 = vmatprep.subr.mxu0 %v3042_v18 }
  0x69   :  { %731 = vmatpush1.msra.mxu0 %v3050_v19 }
  0x6a   :  { %732 = vmatprep.subr.mxu0 %v3066_v22 }
  0x6b   :  { %733 = vmatpush1.msra.mxu0 %v3074_v23 }
  0x6c   :  { %734 = vmatprep.subr.mxu0 %v3090_v26 }
  0x6d   :  { %735 = vmatpush1.msra.mxu0 %v3098_v27 }
  0x6e   :  { %736 = vmatprep.subr.mxu0 %v3114_v30 }
  0x6f   :  { %737 = vmatpush1.msra.mxu0 %v3122_v31 }
  0x70   :  { %738 = vmatprep.subr.mxu0 %v3138_v34 }
  0x71   :  { %739 = vmatpush1.msra.mxu0 %v3146_v35 }
  0x72   :  { %740 = vmatprep.subr.mxu0 %v3162_v38 }
  0x73   :  { %741 = vmatpush1.msra.mxu0 %v3170_v39 }
  0x74   :  { %960 = vmatprep.subr.mxu0 %v3009_v12 }
 0x104   :  { %v226_v45 = vpop.f32.mrf.mxu0  ;;  %v363_v46 = vpop.f32.mrf.mxu1 }
 0x106   :  { %v228_v50 = vpop.f32.mrf.mxu0  ;;  %v365_v51 = vpop.f32.mrf.mxu1 }
 0x107   :  { %v366_v52 = vadd.f32 %v365_v51, %v228_v50 }
 0x108   :  { %v232_v53 = vpop.f32.mrf.mxu0  ;;  %v369_v54 = vpop.f32.mrf.mxu1 }
 0x109   :  { %v423_v56 = vadd.f32 %v3221_v49, %v366_v52  ;;  %v370_v57 = vadd.f32 %v369_v54, %v232_v53 }
 0x10a   :  { %v234_v58 = vpop.f32.mrf.mxu0  ;;  %v371_v59 = vpop.f32.mrf.mxu1 }
 0x10b   :  { %440 = vst.msk [vmem:[#allocation2 + $0x8] sm:$0xff] %vm439_vm1, %v423_v56  ;;  %v3227_v60 = vadd.f32 %v415_v55, %v370_v57  ;;  %v372_v61 = vadd.f32 %v371_v59, %v234_v58 }
 0x10c   :  { %v238_v62 = vpop.f32.mrf.mxu0  ;;  %v375_v63 = vpop.f32.mrf.mxu1 }
 0x10d   :  { %v425_v0 = vadd.f32 %v3221_v49, %v372_v61  ;;  %v376_v2 = vadd.f32 %v375_v63, %v238_v62  ;;  %v364_v61 = vadd.f32 %v363_v46, %v226_v45 }
 0x10e   :  { %v240_v3 = vpop.f32.mrf.mxu0  ;;  %v377_v4 = vpop.f32.mrf.mxu1 }
 0x10f   :  { %442 = vst.msk [vmem:[#allocation2 + $0x18] sm:$0xff] %vm439_vm1, %v425_v0  ;;  %v3231_v5 = vadd.f32 %v415_v55, %v376_v2  ;;  %v378_v6 = vadd.f32 %v377_v4, %v240_v3 }
 0x110   :  { %v244_v7 = vpop.f32.mrf.mxu0  ;;  %v381_v8 = vpop.f32.mrf.mxu1 }
 0x111   :  { %v427_v9 = vadd.f32 %v3221_v49, %v378_v6  ;;  %v382_v10 = vadd.f32 %v381_v8, %v244_v7  ;;  %v422_v8 = vadd.f32 %v415_v55, %v364_v61 }
 0x112   :  { %v246_v11 = vpop.f32.mrf.mxu0  ;;  %v383_v15 = vpop.f32.mrf.mxu1 }
 0x113   :  { %444 = vst.msk [vmem:[#allocation2 + $0x28] sm:$0xff] %vm439_vm1, %v427_v9  ;;  %v3235_v16 = vadd.f32 %v415_v55, %v382_v10  ;;  %v384_v20 = vadd.f32 %v383_v15, %v246_v11 }
 0x114   :  { %v250_v21 = vpop.f32.mrf.mxu0  ;;  %v387_v24 = vpop.f32.mrf.mxu1 }
 0x115   :  { %v429_v25 = vadd.f32 %v3221_v49, %v384_v20  ;;  %v388_v28 = vadd.f32 %v387_v24, %v250_v21 }
 0x116   :  { %v252_v29 = vpop.f32.mrf.mxu0  ;;  %v389_v32 = vpop.f32.mrf.mxu1 }
 0x117   :  { %446 = vst.msk [vmem:[#allocation2 + $0x38] sm:$0xff] %vm439_vm1, %v429_v25  ;;  %v3239_v33 = vadd.f32 %v415_v55, %v388_v28  ;;  %v390_v36 = vadd.f32 %v389_v32, %v252_v29  ;;  %v3255_v25 = vld [vmem:[#allocation8] sm:$0xff] }
 0x118   :  { %v256_v37 = vpop.f32.mrf.mxu0  ;;  %v393_v40 = vpop.f32.mrf.mxu1  ;;  %v456_v32 = vld [vmem:[#allocation2 + $0x8] sm:$0xff] }
 0x119   :  { %v431_v41 = vadd.f32 %v3221_v49, %v390_v36  ;;  %v394_v42 = vadd.f32 %v393_v40, %v256_v37 }
 0x11a   :  { %v258_v47 = vpop.f32.mrf.mxu0  ;;  %v395_v50 = vpop.f32.mrf.mxu1 }
 0x11b   :  { %448 = vst.msk [vmem:[#allocation2 + $0x48] sm:$0xff] %vm439_vm1, %v431_v41  ;;  %v3243_v51 = vadd.f32 %v415_v55, %v394_v42  ;;  %v396_v52 = vadd.f32 %v395_v50, %v258_v47 }
 0x11c   :  { %v262_v53 = vpop.f32.mrf.mxu0  ;;  %v399_v54 = vpop.f32.mrf.mxu1 }
 0x11d   :  { %v433_v56 = vadd.f32 %v3221_v49, %v396_v52  ;;  %v400_v57 = vadd.f32 %v399_v54, %v262_v53 }
 0x11e   :  { %v264_v58 = vpop.f32.mrf.mxu0  ;;  %v401_v59 = vpop.f32.mrf.mxu1 }
 0x11f   :  { %450 = vst.msk [vmem:[#allocation2 + $0x58] sm:$0xff] %vm439_vm1, %v433_v56  ;;  %v3247_v62 = vadd.f32 %v415_v55, %v400_v57  ;;  %v402_v63 = vadd.f32 %v401_v59, %v264_v58 }
 0x120   :  { %v268_v0 = vpop.f32.mrf.mxu0  ;;  %v405_v2 = vpop.f32.mrf.mxu1 }
 0x121   :  { %v435_v3 = vadd.f32 %v3221_v49, %v402_v63  ;;  %v406_v4 = vadd.f32 %v405_v2, %v268_v0  ;;  %v573_v63 = vld [vmem:[#allocation2 + $0x18] sm:$0xff] }
 0x122   :  { %v270_v6 = vpop.f32.mrf.mxu0  ;;  %v407_v7 = vpop.f32.mrf.mxu1 }
 0x123   :  { %452 = vst.msk [vmem:[#allocation2 + $0x68] sm:$0xff] %vm439_vm1, %v435_v3  ;;  %v3251_v9 = vadd.f32 %v415_v55, %v406_v4  ;;  %v408_v10 = vadd.f32 %v407_v7, %v270_v6 }
 0x124   :  { %v542_v11 = vpop.f32.mrf.mxu0 }
 0x125   :  { %v437_v45 = vadd.f32 %v3221_v49, %v408_v10  ;;  %v547_v46 = vadd.f32 %v542_v11, %v422_v8 }
 0x126   :  { %v544_v24 = vpop.f32.mrf.mxu0 }
 0x127   :  { %454 = vst.msk [vmem:[#allocation2 + $0x78] sm:$0xff] %vm439_vm1, %v437_v45  ;;  %v2621_v15 = vmul.f32 -1.442695, %v547_v46  ;;  %v555_v28 = vadd.f32 %v3255_v25, %v544_v24 }
 0x129   :  { %2678 = vpow2.f32 %v2621_v15 }
 0x136   :  { %v2679_v20 = vpop.eup %2678 }
 0x137   :  { %v551_v21 = vadd.f32 1.0, %v2679_v20 }
 0x139   :  { %2680 = vrcp.f32 %v551_v21 }
 0x146   :  { %v2681_v29 = vpop.eup %2680 }
 0x147   :  { %v556_v55 = vmul.f32 %v2681_v29, %v555_v28  ;;  %v690_v28 = vld [vmem:[#allocation2 + $0x28] sm:$0xff] }
 0x149   :  { %v557_v36 = vadd.f32 %v556_v55, %v456_v32 }
 0x14b   :  { %2682 = vtanh.f32 %v557_v36 }
 0x158   :  { %v2683_v37 = vpop.eup %2682 }
 0x159   :  { %v559_v49 = vsub.f32 0.0, %v2683_v37 }
 0x15b   :  { %561 = vrot.lane.b32.xlu0 %v559_v49, %s2892_s4 }
 0x1cd   :  { %v562_v40 = vpop.permute.xlu0 %561 }
 0x1ce   :  { %v564_v41 = vmul.f32 %v2681_v29, %v562_v40 }
 0x1d0   :  { %566 = vrot.lane.b32.xlu0 %v564_v41, %s2892_s4 }
 0x242   :  { %v567_v42 = vpop.permute.xlu0 %566 }
 0x243   :  { %v569_v47 = vadd.f32 %v2683_v37, %v567_v42 }
 0x245   :  { %570 = vst.msk [vmem:[#allocation3] sm:$0xff] %vm439_vm1, %v569_v47  ;;  %571 = vst.msk [vmem:[#allocation4 + $0x38] sm:$0xff] %vm439_vm1, %v569_v47  ;;  %2622 = vmatmul.mubr.msk.f32.vlgmr.msra.gmra.mxu1 %vm439_vm1, %v569_v47 }
 0x246   :  { %844 = vmatpush1.msra.mxu1 %v3014_v13  ;;  %891 = vmatprep.mubr.f32.mxu1 %v2891_v1 }
 0x247   :  { %845 = vmatprep.subr.mxu1 %v3021_v14 }
 0x248   :  { %846 = vmatpush1.msra.mxu1 %v3036_v17 }
 0x249   :  { %847 = vmatprep.subr.mxu1 %v3042_v18 }
 0x24a   :  { %848 = vmatpush1.msra.mxu1 %v3050_v19 }
 0x24b   :  { %849 = vmatprep.subr.mxu1 %v3066_v22 }
 0x24c   :  { %850 = vmatpush1.msra.mxu1 %v3074_v23 }
 0x24d   :  { %851 = vmatprep.subr.mxu1 %v3090_v26 }
 0x24e   :  { %852 = vmatpush1.msra.mxu1 %v3098_v27 }
 0x24f   :  { %853 = vmatprep.subr.mxu1 %v3114_v30 }
 0x250   :  { %854 = vmatpush1.msra.mxu1 %v3122_v31 }
 0x251   :  { %855 = vmatprep.subr.mxu1 %v3138_v34 }
 0x252   :  { %856 = vmatpush1.msra.mxu1 %v3146_v35 }
 0x253   :  { %857 = vmatprep.subr.mxu1 %v3162_v38 }
 0x254   :  { %858 = vmatpush1.msra.mxu1 %v3170_v39 }
 0x255   :  { %1077 = vmatprep.subr.mxu1 %v3009_v12 }
 0x305   :  { %v659_v50 = vpop.f32.mrf.mxu1 }
 0x306   :  { %v664_v52 = vadd.f32 %v659_v50, %v3227_v60 }
 0x307   :  { %v661_v57 = vpop.f32.mrf.mxu1 }
 0x308   :  { %v2623_v53 = vmul.f32 -1.442695, %v664_v52  ;;  %v672_v58 = vadd.f32 %v661_v57, %v3255_v25 }
 0x30a   :  { %2684 = vpow2.f32 %v2623_v53 }
 0x317   :  { %v2685_v54 = vpop.eup %2684 }
 0x318   :  { %v668_v56 = vadd.f32 1.0, %v2685_v54 }
 0x31a   :  { %2686 = vrcp.f32 %v668_v56  ;;  %v807_v56 = vld [vmem:[#allocation2 + $0x38] sm:$0xff] }
 0x327   :  { %v2687_v59 = vpop.eup %2686 }
 0x328   :  { %v673_v61 = vmul.f32 %v2687_v59, %v672_v58 }
 0x32a   :  { %v674_v0 = vadd.f32 %v673_v61, %v573_v63 }
 0x32c   :  { %2688 = vtanh.f32 %v674_v0 }
 0x339   :  { %v2689_v2 = vpop.eup %2688 }
 0x33a   :  { %v676_v3 = vsub.f32 %v569_v47, %v2689_v2 }
 0x33c   :  { %678 = vrot.lane.b32.xlu1 %v676_v3, %s2892_s4 }
 0x3ae   :  { %v679_v4 = vpop.permute.xlu1 %678 }
 0x3af   :  { %v681_v6 = vmul.f32 %v2687_v59, %v679_v4 }
 0x3b1   :  { %683 = vrot.lane.b32.xlu1 %v681_v6, %s2892_s4 }
 0x423   :  { %v684_v60 = vpop.permute.xlu1 %683 }
 0x424   :  { %v686_v7 = vadd.f32 %v2689_v2, %v684_v60  ;;  %v924_v60 = vld [vmem:[#allocation2 + $0x48] sm:$0xff] }
 0x426   :  { %687 = vst.msk [vmem:[#allocation3 + $0x8] sm:$0xff] %vm439_vm1, %v686_v7  ;;  %688 = vst.msk [vmem:[#allocation4 + $0x30] sm:$0xff] %vm439_vm1, %v686_v7  ;;  %2624 = vmatmul.mubr.msk.f32.vlgmr.msra.gmra.mxu0 %vm439_vm1, %v686_v7 }
 0x427   :  { %961 = vmatpush1.msra.mxu0 %v3014_v13  ;;  %1008 = vmatprep.mubr.f32.mxu0 %v2891_v1 }
 0x428   :  { %962 = vmatprep.subr.mxu0 %v3021_v14 }
 0x429   :  { %963 = vmatpush1.msra.mxu0 %v3036_v17 }
 0x42a   :  { %964 = vmatprep.subr.mxu0 %v3042_v18 }
 0x42b   :  { %965 = vmatpush1.msra.mxu0 %v3050_v19 }
 0x42c   :  { %966 = vmatprep.subr.mxu0 %v3066_v22 }
 0x42d   :  { %967 = vmatpush1.msra.mxu0 %v3074_v23 }
 0x42e   :  { %968 = vmatprep.subr.mxu0 %v3090_v26 }
 0x42f   :  { %969 = vmatpush1.msra.mxu0 %v3098_v27 }
 0x430   :  { %970 = vmatprep.subr.mxu0 %v3114_v30 }
 0x431   :  { %971 = vmatpush1.msra.mxu0 %v3122_v31 }
 0x432   :  { %972 = vmatprep.subr.mxu0 %v3138_v34 }
 0x433   :  { %973 = vmatpush1.msra.mxu0 %v3146_v35 }
 0x434   :  { %974 = vmatprep.subr.mxu0 %v3162_v38 }
 0x435   :  { %975 = vmatpush1.msra.mxu0 %v3170_v39 }
 0x436   :  { %1194 = vmatprep.subr.mxu0 %v3009_v12 }
 0x4e6   :  { %v776_v8 = vpop.f32.mrf.mxu0 }
 0x4e7   :  { %v781_v10 = vadd.f32 %v776_v8, %v3231_v5 }
 0x4e8   :  { %v778_v15 = vpop.f32.mrf.mxu0 }
 0x4e9   :  { %v2625_v11 = vmul.f32 -1.442695, %v781_v10  ;;  %v789_v20 = vadd.f32 %v778_v15, %v3255_v25 }
 0x4eb   :  { %2690 = vpow2.f32 %v2625_v11 }
 0x4f8   :  { %v2691_v45 = vpop.eup %2690 }
 0x4f9   :  { %v785_v46 = vadd.f32 1.0, %v2691_v45 }
 0x4fb   :  { %2692 = vrcp.f32 %v785_v46 }
 0x508   :  { %v2693_v21 = vpop.eup %2692 }
 0x509   :  { %v790_v24 = vmul.f32 %v2693_v21, %v789_v20 }
 0x50b   :  { %v791_v29 = vadd.f32 %v790_v24, %v690_v28 }
 0x50d   :  { %2694 = vtanh.f32 %v791_v29 }
 0x51a   :  { %v2695_v55 = vpop.eup %2694 }
 0x51b   :  { %v793_v32 = vsub.f32 %v686_v7, %v2695_v55 }
 0x51d   :  { %795 = vrot.lane.b32.xlu0 %v793_v32, %s2892_s4 }
 0x58f   :  { %v796_v12 = vpop.permute.xlu0 %795 }
 0x590   :  { %v798_v36 = vmul.f32 %v2693_v21, %v796_v12 }
 0x592   :  { %800 = vrot.lane.b32.xlu1 %v798_v36, %s2892_s4  ;;  %v1041_v36 = vld [vmem:[#allocation2 + $0x58] sm:$0xff] }
 0x604   :  { %v801_v5 = vpop.permute.xlu1 %800 }
 0x605   :  { %v803_v37 = vadd.f32 %v2695_v55, %v801_v5 }
 0x607   :  { %804 = vst.msk [vmem:[#allocation3 + $0x10] sm:$0xff] %vm439_vm1, %v803_v37  ;;  %805 = vst.msk [vmem:[#allocation4 + $0x28] sm:$0xff] %vm439_vm1, %v803_v37  ;;  %2626 = vmatmul.mubr.msk.f32.vlgmr.msra.gmra.mxu1 %vm439_vm1, %v803_v37 }
 0x608   :  { %1078 = vmatpush1.msra.mxu1 %v3014_v13  ;;  %1125 = vmatprep.mubr.f32.mxu1 %v2891_v1 }
 0x609   :  { %1079 = vmatprep.subr.mxu1 %v3021_v14 }
 0x60a   :  { %1080 = vmatpush1.msra.mxu1 %v3036_v17 }
 0x60b   :  { %1081 = vmatprep.subr.mxu1 %v3042_v18 }
 0x60c   :  { %1082 = vmatpush1.msra.mxu1 %v3050_v19 }
 0x60d   :  { %1083 = vmatprep.subr.mxu1 %v3066_v22 }
 0x60e   :  { %1084 = vmatpush1.msra.mxu1 %v3074_v23 }
 0x60f   :  { %1085 = vmatprep.subr.mxu1 %v3090_v26 }
 0x610   :  { %1086 = vmatpush1.msra.mxu1 %v3098_v27 }
 0x611   :  { %1087 = vmatprep.subr.mxu1 %v3114_v30 }
 0x612   :  { %1088 = vmatpush1.msra.mxu1 %v3122_v31 }
 0x613   :  { %1089 = vmatprep.subr.mxu1 %v3138_v34 }
 0x614   :  { %1090 = vmatpush1.msra.mxu1 %v3146_v35 }
 0x615   :  { %1091 = vmatprep.subr.mxu1 %v3162_v38 }
 0x616   :  { %1092 = vmatpush1.msra.mxu1 %v3170_v39 }
 0x6c7   :  { %v893_v49 = vpop.f32.mrf.mxu1 }
 0x6c8   :  { %v898_v40 = vadd.f32 %v893_v49, %v3235_v16 }
 0x6c9   :  { %v895_v50 = vpop.f32.mrf.mxu1 }
 0x6ca   :  { %v2627_v41 = vmul.f32 -1.442695, %v898_v40  ;;  %v906_v52 = vadd.f32 %v895_v50, %v3255_v25 }
 0x6cc   :  { %2696 = vpow2.f32 %v2627_v41 }
 0x6d9   :  { %v2697_v42 = vpop.eup %2696 }
 0x6da   :  { %v902_v47 = vadd.f32 1.0, %v2697_v42 }
 0x6dc   :  { %2698 = vrcp.f32 %v902_v47 }
 0x6e9   :  { %v2699_v53 = vpop.eup %2698 }
 0x6ea   :  { %v907_v54 = vmul.f32 %v2699_v53, %v906_v52 }
 0x6ec   :  { %v908_v57 = vadd.f32 %v907_v54, %v807_v56 }
 0x6ee   :  { %2700 = vtanh.f32 %v908_v57 }
 0x6fb   :  { %v2701_v58 = vpop.eup %2700 }
 0x6fc   :  { %v910_v59 = vsub.f32 %v803_v37, %v2701_v58 }
 0x6fe   :  { %912 = vrot.lane.b32.xlu0 %v910_v59, %s2892_s4 }
 0x770   :  { %v913_v61 = vpop.permute.xlu0 %912 }
 0x771   :  { %v915_v63 = vmul.f32 %v2699_v53, %v913_v61  ;;  %v1158_v61 = vld [vmem:[#allocation2 + $0x68] sm:$0xff] }
 0x773   :  { %917 = vrot.lane.b32.xlu1 %v915_v63, %s2892_s4 }
 0x7e5   :  { %v918_v16 = vpop.permute.xlu1 %917 }
 0x7e6   :  { %v920_v0 = vadd.f32 %v2701_v58, %v918_v16  ;;  %v1291_v16 = vld [vmem:[%s3843_s5 + $0x78] sm:$0xff] }
 0x7e7   :  { %1311 = vmatprep.subr.mxu1 %v1291_v16  ;;  %v1426_v16 = vld [vmem:[%s3846_s8 + $0x18] sm:$0xff] }
 0x7e8   :  { %921 = vst.msk [vmem:[#allocation3 + $0x18] sm:$0xff] %vm439_vm1, %v920_v0  ;;  %922 = vst.msk [vmem:[#allocation4 + $0x20] sm:$0xff] %vm439_vm1, %v920_v0  ;;  %2628 = vmatmul.mubr.msk.f32.vlgmr.msra.gmra.mxu0 %vm439_vm1, %v920_v0 }
 0x7e9   :  { %1195 = vmatpush1.msra.mxu0 %v3014_v13  ;;  %1242 = vmatprep.mubr.f32.mxu0 %v2891_v1 }
 0x7ea   :  { %1196 = vmatprep.subr.mxu0 %v3021_v14 }
 0x7eb   :  { %1197 = vmatpush1.msra.mxu0 %v3036_v17 }
 0x7ec   :  { %1198 = vmatprep.subr.mxu0 %v3042_v18 }
 0x7ed   :  { %1199 = vmatpush1.msra.mxu0 %v3050_v19 }
 0x7ee   :  { %1200 = vmatprep.subr.mxu0 %v3066_v22 }
 0x7ef   :  { %1201 = vmatpush1.msra.mxu0 %v3074_v23 }
 0x7f0   :  { %1202 = vmatprep.subr.mxu0 %v3090_v26 }
 0x7f1   :  { %1203 = vmatpush1.msra.mxu0 %v3098_v27 }
 0x7f2   :  { %1204 = vmatprep.subr.mxu0 %v3114_v30 }
 0x7f3   :  { %1205 = vmatpush1.msra.mxu0 %v3122_v31 }
 0x7f4   :  { %1206 = vmatprep.subr.mxu0 %v3138_v34 }
 0x7f5   :  { %1207 = vmatpush1.msra.mxu0 %v3146_v35 }
 0x7f6   :  { %1208 = vmatprep.subr.mxu0 %v3162_v38 }
 0x7f7   :  { %1209 = vmatpush1.msra.mxu0 %v3170_v39 }
 0x8a8   :  { %v1010_v13 = vpop.f32.mrf.mxu0 }
 0x8a9   :  { %v1015_v14 = vadd.f32 %v1010_v13, %v3239_v33  ;;  %v1288_v13 = vld [vmem:[%s3843_s5 + $0x60] sm:$0xff] }
 0x8aa   :  { %v1012_v2 = vpop.f32.mrf.mxu0 }
 0x8ab   :  { %v2629_v17 = vmul.f32 -1.442695, %v1015_v14  ;;  %v1023_v3 = vadd.f32 %v1012_v2, %v3255_v25  ;;  %v1287_v14 = vld [vmem:[%s3843_s5 + $0x58] sm:$0xff]  ;;  %v1416_v2 = vld [vmem:[%s3845_s7 + $0x48] sm:$0xff] }
 0x8ad   :  { %2702 = vpow2.f32 %v2629_v17  ;;  %v1286_v17 = vld [vmem:[%s3843_s5 + $0x50] sm:$0xff] }
 0x8ba   :  { %v2703_v18 = vpop.eup %2702 }
 0x8bb   :  { %v1019_v19 = vadd.f32 1.0, %v2703_v18 }
 0x8bd   :  { %2704 = vrcp.f32 %v1019_v19 }
 0x8ca   :  { %v2705_v4 = vpop.eup %2704 }
 0x8cb   :  { %v1024_v6 = vmul.f32 %v2705_v4, %v1023_v3  ;;  %v1415_v3 = vld [vmem:[%s3845_s7 + $0x40] sm:$0xff] }
 0x8cd   :  { %v1025_v7 = vadd.f32 %v1024_v6, %v924_v60  ;;  %v1413_v6 = vld [vmem:[%s3845_s7 + $0x30] sm:$0xff]  ;;  %v1412_v60 = vld [vmem:[%s3845_s7 + $0x28] sm:$0xff] }
 0x8cf   :  { %2706 = vtanh.f32 %v1025_v7  ;;  %v1411_v7 = vld [vmem:[%s3845_s7 + $0x20] sm:$0xff] }
 0x8dc   :  { %v2707_v8 = vpop.eup %2706 }
 0x8dd   :  { %v1027_v10 = vsub.f32 %v920_v0, %v2707_v8  ;;  %v1289_v0 = vld [vmem:[%s3843_s5 + $0x68] sm:$0xff] }
 0x8df   :  { %1029 = vrot.lane.b32.xlu0 %v1027_v10, %s2892_s4  ;;  %v1409_v10 = vld [vmem:[%s3845_s7 + $0x10] sm:$0xff] }
 0x951   :  { %v1030_v11 = vpop.permute.xlu0 %1029 }
 0x952   :  { %v1032_v45 = vmul.f32 %v2705_v4, %v1030_v11  ;;  %v1414_v4 = vld [vmem:[%s3845_s7 + $0x38] sm:$0xff]  ;;  %v1408_v11 = vld [vmem:[%s3845_s7 + $0x8] sm:$0xff] }
 0x954   :  { %1034 = vrot.lane.b32.xlu1 %v1032_v45, %s2892_s4  ;;  %v1407_v45 = vld [vmem:[%s3845_s7] sm:$0xff] }
 0x9c6   :  { %v1035_v33 = vpop.permute.xlu1 %1034 }
 0x9c7   :  { %v1037_v46 = vadd.f32 %v2707_v8, %v1035_v33  ;;  %v1410_v8 = vld [vmem:[%s3845_s7 + $0x18] sm:$0xff]  ;;  %v1391_v33 = vld [vmem:[#allocation3] sm:$0xff] }
 0x9c9   :  { %1038 = vst.msk [vmem:[#allocation3 + $0x20] sm:$0xff] %vm439_vm1, %v1037_v46  ;;  %1039 = vst.msk [vmem:[#allocation4 + $0x18] sm:$0xff] %vm439_vm1, %v1037_v46  ;;  %2630 = vmatmul.mubr.msk.f32.vlgmr.msra.gmra.mxu1 %vm439_vm1, %v1037_v46 }
 0x9ca   :  { %1359 = vmatprep.mubr.f32.mxu1 %v2891_v1 }
 0xa89   :  { %v1127_v15 = vpop.f32.mrf.mxu1 }
 0xa8a   :  { %v1132_v20 = vadd.f32 %v1127_v15, %v3243_v51  ;;  %v1393_v15 = vld [vmem:[#allocation3 + $0x10] sm:$0xff] }
 0xa8b   :  { %v1129_v29 = vpop.f32.mrf.mxu1 }
 0xa8c   :  { %v2631_v21 = vmul.f32 -1.442695, %v1132_v20  ;;  %v1140_v55 = vadd.f32 %v1129_v29, %v3255_v25  ;;  %v1394_v20 = vld [vmem:[#allocation3 + $0x18] sm:$0xff] }
 0xa8e   :  { %2708 = vpow2.f32 %v2631_v21  ;;  %v1395_v21 = vld [vmem:[#allocation3 + $0x20] sm:$0xff] }
 0xa9b   :  { %v2709_v24 = vpop.eup %2708 }
 0xa9c   :  { %v1136_v28 = vadd.f32 1.0, %v2709_v24 }
 0xa9e   :  { %2710 = vrcp.f32 %v1136_v28 }
 0xaab   :  { %v2711_v32 = vpop.eup %2710 }
 0xaac   :  { %v1141_v12 = vmul.f32 %v2711_v32, %v1140_v55 }
 0xaae   :  { %v1142_v5 = vadd.f32 %v1141_v12, %v1041_v36 }
 0xab0   :  { %2712 = vtanh.f32 %v1142_v5 }
 0xabd   :  { %v2713_v37 = vpop.eup %2712 }
 0xabe   :  { %v1144_v49 = vsub.f32 %v1037_v46, %v2713_v37  ;;  %v1392_v46 = vld [vmem:[#allocation3 + $0x8] sm:$0xff] }
 0xac0   :  { %1146 = vrot.lane.b32.xlu0 %v1144_v49, %s2892_s4 }
 0xb32   :  { %v1147_v40 = vpop.permute.xlu0 %1146 }
 0xb33   :  { %v1149_v41 = vmul.f32 %v2711_v32, %v1147_v40 }
 0xb35   :  { %1151 = vrot.lane.b32.xlu1 %v1149_v41, %s2892_s4  ;;  %v1275_v41 = vld [vmem:[#allocation2 + $0x78] sm:$0xff] }
 0xba7   :  { %v1152_v51 = vpop.permute.xlu1 %1151 }
 0xba8   :  { %v1154_v42 = vadd.f32 %v2713_v37, %v1152_v51 }
 0xbaa   :  { %1155 = vst.msk [vmem:[#allocation3 + $0x28] sm:$0xff] %vm439_vm1, %v1154_v42  ;;  %1156 = vst.msk [vmem:[#allocation4 + $0x10] sm:$0xff] %vm439_vm1, %v1154_v42  ;;  %2632 = vmatmul.mubr.msk.f32.vlgmr.msra.gmra.mxu0 %vm439_vm1, %v1154_v42 }
 0xbab   :  { %1527 = vmatprep.mubr.f32.mxu0 %v2891_v1 }
 0xbb1   :  { %v1396_v24 = vld [vmem:[#allocation3 + $0x28] sm:$0xff] }
 0xc6a   :  { %v1244_v47 = vpop.f32.mrf.mxu0 }
 0xc6b   :  { %v1249_v50 = vadd.f32 %v1244_v47, %v3247_v62  ;;  %v1290_v62 = vld [vmem:[%s3843_s5 + $0x70] sm:$0xff]  ;;  %v1436_v47 = vld [vmem:[%s3846_s8 + $0x68] sm:$0xff] }
 0xc6c   :  { %v1246_v56 = vpop.f32.mrf.mxu0  ;;  %1312 = vmatpush1.msra.mxu1 %v1290_v62  ;;  %v1425_v62 = vld [vmem:[%s3846_s8 + $0x10] sm:$0xff] }
 0xc6d   :  { %v2633_v52 = vmul.f32 -1.442695, %v1249_v50  ;;  %v1257_v57 = vadd.f32 %v1246_v56, %v3255_v25  ;;  %1313 = vmatprep.subr.mxu1 %v1289_v0  ;;  %v1434_v50 = vld [vmem:[%s3846_s8 + $0x58] sm:$0xff]  ;;  %v1432_v56 = vld [vmem:[%s3846_s8 + $0x48] sm:$0xff] }
 0xc6e   :  { %1314 = vmatpush1.msra.mxu1 %v1288_v13  ;;  %v1424_v0 = vld [vmem:[%s3846_s8 + $0x8] sm:$0xff]  ;;  %v1423_v13 = vld [vmem:[%s3846_s8] sm:$0xff] }
 0xc6f   :  { %2714 = vpow2.f32 %v2633_v52  ;;  %1315 = vmatprep.subr.mxu1 %v1287_v14  ;;  %v1433_v52 = vld [vmem:[%s3846_s8 + $0x50] sm:$0xff] }
 0xc70   :  { %1316 = vmatpush1.msra.mxu1 %v1286_v17  ;;  %v3521_v17 = vld [vmem:[#allocation11 + $0x78] sm:$0xff] }
 0xc71   :  { %1317 = vmatprep.subr.mxu1 %v3066_v22  ;;  %v1422_v22 = vld [vmem:[%s3845_s7 + $0x78] sm:$0xff] }
 0xc72   :  { %1318 = vmatpush1.msra.mxu1 %v3074_v23 }
 0xc73   :  { %1319 = vmatprep.subr.mxu1 %v3090_v26 }
 0xc74   :  { %1320 = vmatpush1.msra.mxu1 %v3098_v27 }
 0xc75   :  { %1321 = vmatprep.subr.mxu1 %v3114_v30 }
 0xc76   :  { %1322 = vmatpush1.msra.mxu1 %v3122_v31  ;;  %v1421_v31 = vld [vmem:[%s3845_s7 + $0x70] sm:$0xff] }
 0xc77   :  { %1323 = vmatprep.subr.mxu1 %v3138_v34  ;;  %v1420_v34 = vld [vmem:[%s3845_s7 + $0x68] sm:$0xff] }
 0xc78   :  { %1324 = vmatpush1.msra.mxu1 %v3146_v35  ;;  %v1419_v35 = vld [vmem:[%s3845_s7 + $0x60] sm:$0xff] }
 0xc79   :  { %1325 = vmatprep.subr.mxu1 %v3162_v38  ;;  %v1418_v38 = vld [vmem:[%s3845_s7 + $0x58] sm:$0xff] }
 0xc7a   :  { %1326 = vmatpush1.msra.mxu1 %v3170_v39  ;;  %v1417_v39 = vld [vmem:[%s3845_s7 + $0x50] sm:$0xff] }
 0xc7b   :  { %1616 = vmatprep.subr.mxu1 %v1422_v22  ;;  %v3529_v22 = vld [vmem:[#allocation11 + $0x68] sm:$0xff] }
 0xc7c   :  { %v2715_v53 = vpop.eup %2714 }
 0xc7d   :  { %v1253_v54 = vadd.f32 1.0, %v2715_v53 }
 0xc7f   :  { %2716 = vrcp.f32 %v1253_v54 }
 0xc8c   :  { %v2717_v58 = vpop.eup %2716 }
 0xc8d   :  { %v1258_v59 = vmul.f32 %v2717_v58, %v1257_v57  ;;  %v1431_v57 = vld [vmem:[%s3846_s8 + $0x40] sm:$0xff] }
 0xc8f   :  { %v1259_v63 = vadd.f32 %v1258_v59, %v1158_v61  ;;  %v1429_v59 = vld [vmem:[%s3846_s8 + $0x30] sm:$0xff]  ;;  %v1428_v61 = vld [vmem:[%s3846_s8 + $0x28] sm:$0xff] }
 0xc91   :  { %2718 = vtanh.f32 %v1259_v63  ;;  %v1427_v63 = vld [vmem:[%s3846_s8 + $0x20] sm:$0xff] }
 0xc9e   :  { %v2719_v18 = vpop.eup %2718 }
 0xc9f   :  { %v1261_v19 = vsub.f32 %v1154_v42, %v2719_v18  ;;  %v1438_v42 = vld [vmem:[%s3846_s8 + $0x78] sm:$0xff] }
 0xca0   :  { %1479 = vmatprep.subr.mxu0 %v1438_v42 }
 0xca1   :  { %1263 = vrot.lane.b32.xlu0 %v1261_v19, %s2892_s4  ;;  %v3524_v19 = vld [vmem:[#allocation11 + $0x70] sm:$0xff] }
 0xd13   :  { %v1264_v23 = vpop.permute.xlu0 %1263 }
 0xd14   :  { %v1266_v26 = vmul.f32 %v2717_v58, %v1264_v23  ;;  %v1430_v58 = vld [vmem:[%s3846_s8 + $0x38] sm:$0xff]  ;;  %v3531_v23 = vld [vmem:[#allocation11 + $0x60] sm:$0xff] }
 0xd16   :  { %1268 = vrot.lane.b32.xlu1 %v1266_v26, %s2892_s4  ;;  %v3535_v26 = vld [vmem:[#allocation11 + $0x58] sm:$0xff] }
 0xd88   :  { %v1269_v27 = vpop.permute.xlu1 %1268 }
 0xd89   :  { %v3401_v30 = vadd.f32 %v2719_v18, %v1269_v27  ;;  %v3537_v27 = vld [vmem:[#allocation11 + $0x50] sm:$0xff] }
 0xd8b   :  { %1272 = vst.msk [vmem:[#allocation3 + $0x30] sm:$0xff] %vm439_vm1, %v3401_v30  ;;  %1273 = vst.msk [vmem:[#allocation4 + $0x8] sm:$0xff] %vm439_vm1, %v3401_v30  ;;  %2634 = vmatmul.mubr.msk.f32.vlgmr.msra.gmra.mxu1 %vm439_vm1, %v3401_v30 }
 0xd8c   :  { %1617 = vmatpush1.msra.mxu1 %v1421_v31  ;;  %1664 = vmatprep.mubr.f32.mxu1 %v2891_v1  ;;  %v3543_v31 = vld [vmem:[#allocation11 + $0x40] sm:$0xff] }
 0xd8d   :  { %1618 = vmatprep.subr.mxu1 %v1420_v34  ;;  %v3547_v34 = vld [vmem:[#allocation11 + $0x38] sm:$0xff] }
 0xd8e   :  { %1619 = vmatpush1.msra.mxu1 %v1419_v35  ;;  %v3549_v35 = vld [vmem:[#allocation11 + $0x30] sm:$0xff] }
 0xd8f   :  { %1620 = vmatprep.subr.mxu1 %v1418_v38  ;;  %v3553_v38 = vld [vmem:[#allocation11 + $0x28] sm:$0xff] }
 0xd90   :  { %1621 = vmatpush1.msra.mxu1 %v1417_v39  ;;  %v3555_v39 = vld [vmem:[#allocation11 + $0x20] sm:$0xff] }
 0xd91   :  { %1622 = vmatprep.subr.mxu1 %v1416_v2  ;;  %v3559_v2 = vld [vmem:[#allocation11 + $0x18] sm:$0xff] }
 0xd92   :  { %1623 = vmatpush1.msra.mxu1 %v1415_v3  ;;  %v1397_v28 = vld [vmem:[#allocation3 + $0x30] sm:$0xff]  ;;  %v3561_v3 = vld [vmem:[#allocation11 + $0x10] sm:$0xff] }
 0xd93   :  { %1624 = vmatprep.subr.mxu1 %v1414_v4  ;;  %v3565_v4 = vld [vmem:[#allocation11 + $0x8] sm:$0xff] }
 0xd94   :  { %1625 = vmatpush1.msra.mxu1 %v1413_v6  ;;  %v3567_v6 = vld [vmem:[#allocation11] sm:$0xff] }
 0xd95   :  { %1626 = vmatprep.subr.mxu1 %v1412_v60 }
 0xd96   :  { %1627 = vmatpush1.msra.mxu1 %v1411_v7 }
 0xd97   :  { %1628 = vmatprep.subr.mxu1 %v1410_v8 }
 0xd98   :  { %1629 = vmatpush1.msra.mxu1 %v1409_v10 }
 0xd99   :  { %1630 = vmatprep.subr.mxu1 %v1408_v11  ;;  %v1400_v11 = vld [vmem:[#allocation4 + $0x8] sm:$0xff] }
 0xd9a   :  { %1631 = vmatpush1.msra.mxu1 %v1407_v45  ;;  %v1401_v45 = vld [vmem:[#allocation4 + $0x10] sm:$0xff] }
 0xd9b   :  { %2644 = vmatmul.mubr.msk.f32.vlgmr.msra.gmra.mxu1 %vm439_vm1, %v1391_v33  ;;  %1893 = vmatprep.subr.mxu1 %v3521_v17  ;;  %v1402_v33 = vld [vmem:[#allocation4 + $0x18] sm:$0xff] }
 0xd9c   :  { %1670 = vmatprep.mubr.f32.mxu1 %v2891_v1  ;;  %1894 = vmatpush1.msra.mxu1 %v3524_v19 }
 0xd9d   :  { %1895 = vmatprep.subr.mxu1 %v3529_v22 }
 0xd9e   :  { %1896 = vmatpush1.msra.mxu1 %v3531_v23 }
 0xd9f   :  { %2645 = vmatmul.mubr.msk.f32.gmra.mxu1 %vm439_vm1, %v1392_v46  ;;  %1897 = vmatprep.subr.mxu1 %v3535_v26  ;;  %v1403_v46 = vld [vmem:[#allocation4 + $0x20] sm:$0xff] }
 0xda0   :  { %1676 = vmatprep.mubr.f32.mxu1 %v2891_v1  ;;  %1898 = vmatpush1.msra.mxu1 %v3537_v27 }
 0xda3   :  { %2646 = vmatmul.mubr.msk.f32.gmra.mxu1 %vm439_vm1, %v1393_v15  ;;  %v1404_v15 = vld [vmem:[#allocation4 + $0x28] sm:$0xff] }
 0xda4   :  { %1682 = vmatprep.mubr.f32.mxu1 %v2891_v1 }
 0xda7   :  { %2647 = vmatmul.mubr.msk.f32.gmra.mxu1 %vm439_vm1, %v1394_v20  ;;  %v1405_v20 = vld [vmem:[#allocation4 + $0x30] sm:$0xff] }
 0xda8   :  { %1688 = vmatprep.mubr.f32.mxu1 %v2891_v1 }
 0xdab   :  { %2648 = vmatmul.mubr.msk.f32.gmra.mxu1 %vm439_vm1, %v1395_v21  ;;  %v1406_v21 = vld [vmem:[#allocation4 + $0x38] sm:$0xff] }
 0xdac   :  { %1694 = vmatprep.mubr.f32.mxu1 %v2891_v1 }
 0xdaf   :  { %2649 = vmatmul.mubr.msk.f32.gmra.mxu1 %vm439_vm1, %v1396_v24 }
 0xdb0   :  { %1700 = vmatprep.mubr.f32.mxu1 %v2891_v1 }
 0xdb3   :  { %2650 = vmatmul.mubr.msk.f32.gmra.mxu1 %vm439_vm1, %v1397_v28 }
 0xdb4   :  { %1706 = vmatprep.mubr.f32.mxu1 %v2891_v1 }
 0xe4b   :  { %v1361_v29 = vpop.f32.mrf.mxu1 }
 0xe4c   :  { %v1366_v55 = vadd.f32 %v1361_v29, %v3251_v9  ;;  %v1437_v9 = vld [vmem:[%s3846_s8 + $0x70] sm:$0xff] }
 0xe4d   :  { %v1363_v5 = vpop.f32.mrf.mxu1  ;;  %1480 = vmatpush1.msra.mxu0 %v1437_v9 }
 0xe4e   :  { %v2635_v32 = vmul.f32 -1.442695, %v1366_v55  ;;  %v1374_v37 = vadd.f32 %v1363_v5, %v3255_v25  ;;  %v1435_v25 = vld [vmem:[%s3846_s8 + $0x60] sm:$0xff]  ;;  %1481 = vmatprep.subr.mxu0 %v1436_v47  ;;  %v1713_v5 = vld [vmem:[#allocation10] sm:$0x3] }
 0xe4f   :  { %1482 = vmatpush1.msra.mxu0 %v1435_v25 }
 0xe50   :  { %2720 = vpow2.f32 %v2635_v32  ;;  %1483 = vmatprep.subr.mxu0 %v1434_v50 }
 0xe51   :  { %1484 = vmatpush1.msra.mxu0 %v1433_v52 }
 0xe52   :  { %1485 = vmatprep.subr.mxu0 %v1432_v56 }
 0xe53   :  { %1486 = vmatpush1.msra.mxu0 %v1431_v57 }
 0xe54   :  { %1487 = vmatprep.subr.mxu0 %v1430_v58 }
 0xe55   :  { %1488 = vmatpush1.msra.mxu0 %v1429_v59 }
 0xe56   :  { %1489 = vmatprep.subr.mxu0 %v1428_v61 }
 0xe57   :  { %1490 = vmatpush1.msra.mxu0 %v1427_v63 }
 0xe58   :  { %1491 = vmatprep.subr.mxu0 %v1426_v16 }
 0xe59   :  { %1492 = vmatpush1.msra.mxu0 %v1425_v62 }
 0xe5a   :  { %1493 = vmatprep.subr.mxu0 %v1424_v0 }
 0xe5b   :  { %1494 = vmatpush1.msra.mxu0 %v1423_v13  ;;  %v1666_v24 = vpop.f32.mrf.mxu1 }
 0xe5c   :  { %1791 = vmatprep.subr.mxu0 %v3521_v17 }
 0xe5d   :  { %v2721_v12 = vpop.eup %2720  ;;  %v1668_v28 = vpop.f32.mrf.mxu1 }
 0xe5e   :  { %v1370_v36 = vadd.f32 1.0, %v2721_v12 }
 0xe5f   :  { %v1672_v29 = vpop.f32.mrf.mxu1 }
 0xe60   :  { %2722 = vrcp.f32 %v1370_v36 }
 0xe61   :  { %v1674_v55 = vpop.f32.mrf.mxu1 }
 0xe63   :  { %v1678_v32 = vpop.f32.mrf.mxu1 }
 0xe65   :  { %v1680_v12 = vpop.f32.mrf.mxu1 }
 0xe67   :  { %v1684_v36 = vpop.f32.mrf.mxu1 }
 0xe6d   :  { %v2723_v49 = vpop.eup %2722 }
 0xe6e   :  { %v1375_v40 = vmul.f32 %v2723_v49, %v1374_v37  ;;  %v3628_v37 = vrot.slane %v1713_v5, %v414_v48 }
 0xe70   :  { %v1376_v51 = vadd.f32 %v1375_v40, %v1275_v41 }
 0xe72   :  { %2724 = vtanh.f32 %v1376_v51  ;;  %v1722_v51 = vrot.slane %v1713_v5, %v418_v44 }
 0xe7f   :  { %v2725_v53 = vpop.eup %2724 }
 0xe80   :  { %v1378_v54 = vsub.f32 %v3401_v30, %v2725_v53  ;;  %v3541_v30 = vld [vmem:[#allocation11 + $0x48] sm:$0xff] }
 0xe81   :  { %1899 = vmatprep.subr.mxu1 %v3541_v30 }
 0xe82   :  { %1380 = vrot.lane.b32.xlu0 %v1378_v54, %s2892_s4  ;;  %1900 = vmatpush1.msra.mxu1 %v3543_v31 }
 0xe83   :  { %1901 = vmatprep.subr.mxu1 %v3547_v34 }
 0xe84   :  { %1902 = vmatpush1.msra.mxu1 %v3549_v35 }
 0xe85   :  { %1903 = vmatprep.subr.mxu1 %v3553_v38 }
 0xe86   :  { %1904 = vmatpush1.msra.mxu1 %v3555_v39 }
 0xe87   :  { %1905 = vmatprep.subr.mxu1 %v3559_v2 }
 0xe88   :  { %1906 = vmatpush1.msra.mxu1 %v3561_v3 }
 0xe89   :  { %1907 = vmatprep.subr.mxu1 %v3565_v4 }
 0xe8a   :  { %1908 = vmatpush1.msra.mxu1 %v3567_v6 }
 0xe8b   :  { %2095 = vmatprep.subr.mxu1 %v3521_v17 }
 0xef4   :  { %v1381_v14 = vpop.permute.xlu0 %1380 }
 0xef5   :  { %v1383_v18 = vmul.f32 %v2723_v49, %v1381_v14  ;;  %v1686_v49 = vpop.f32.mrf.mxu1 }
 0xef7   :  { %1385 = vrot.lane.b32.xlu1 %v1383_v18, %s2892_s4  ;;  %v1690_v25 = vpop.f32.mrf.mxu1 }
 0xef9   :  { %v1692_v57 = vpop.f32.mrf.mxu1 }
 0xefb   :  { %v1696_v16 = vpop.f32.mrf.mxu1 }
 0xf69   :  { %v1386_v60 = vpop.permute.xlu1 %1385 }
 0xf6a   :  { %v1388_v7 = vadd.f32 %v2725_v53, %v1386_v60 }
 0xf6c   :  { %1389 = vst.msk [vmem:[#allocation3 + $0x38] sm:$0xff] %vm439_vm1, %v1388_v7  ;;  %1390 = vst.msk [vmem:[#allocation4] sm:$0xff] %vm439_vm1, %v1388_v7  ;;  %v1698_v7 = vpop.f32.mrf.mxu1 }
 0xf73   :  { %v1399_v8 = vld [vmem:[#allocation4] sm:$0xff]  ;;  %v1398_v10 = vld [vmem:[#allocation3 + $0x38] sm:$0xff] }
 0xf74   :  { %2636 = vmatmul.mubr.msk.f32.vlgmr.msra.gmra.mxu0 %vm439_vm1, %v1399_v8  ;;  %2651 = vmatmul.mubr.msk.f32.gmra.mxu1 %vm439_vm1, %v1398_v10 }
 0xf75   :  { %1792 = vmatpush1.msra.mxu0 %v3524_v19  ;;  %1533 = vmatprep.mubr.f32.mxu0 %v2891_v1 }
 0xf76   :  { %1793 = vmatprep.subr.mxu0 %v3529_v22  ;;  %1941 = vmatprep.mubr.f32.mxu1 %v2891_v1 }
 0xf77   :  { %1794 = vmatpush1.msra.mxu0 %v3531_v23 }
 0xf78   :  { %2637 = vmatmul.mubr.msk.f32.gmra.mxu0 %vm439_vm1, %v1400_v11  ;;  %1795 = vmatprep.subr.mxu0 %v3535_v26 }
 0xf79   :  { %1539 = vmatprep.mubr.f32.mxu0 %v2891_v1  ;;  %1796 = vmatpush1.msra.mxu0 %v3537_v27 }
 0xf7a   :  { %1797 = vmatprep.subr.mxu0 %v3541_v30 }
 0xf7b   :  { %1798 = vmatpush1.msra.mxu0 %v3543_v31 }
 0xf7c   :  { %2638 = vmatmul.mubr.msk.f32.gmra.mxu0 %vm439_vm1, %v1401_v45  ;;  %1799 = vmatprep.subr.mxu0 %v3547_v34 }
 0xf7d   :  { %1545 = vmatprep.mubr.f32.mxu0 %v2891_v1  ;;  %1800 = vmatpush1.msra.mxu0 %v3549_v35 }
 0xf7e   :  { %1801 = vmatprep.subr.mxu0 %v3553_v38 }
 0xf7f   :  { %1802 = vmatpush1.msra.mxu0 %v3555_v39 }
 0xf80   :  { %2639 = vmatmul.mubr.msk.f32.gmra.mxu0 %vm439_vm1, %v1402_v33  ;;  %1803 = vmatprep.subr.mxu0 %v3559_v2 }
 0xf81   :  { %1551 = vmatprep.mubr.f32.mxu0 %v2891_v1  ;;  %1804 = vmatpush1.msra.mxu0 %v3561_v3 }
 0xf82   :  { %1805 = vmatprep.subr.mxu0 %v3565_v4 }
 0xf83   :  { %1806 = vmatpush1.msra.mxu0 %v3567_v6 }
 0xf84   :  { %2640 = vmatmul.mubr.msk.f32.gmra.mxu0 %vm439_vm1, %v1403_v46  ;;  %1994 = vmatprep.subr.mxu0 %v3521_v17 }
 0xf85   :  { %1557 = vmatprep.mubr.f32.mxu0 %v2891_v1 }
 0xf88   :  { %2641 = vmatmul.mubr.msk.f32.gmra.mxu0 %vm439_vm1, %v1404_v15  ;;  %v1702_v15 = vpop.f32.mrf.mxu1 }
 0xf89   :  { %1563 = vmatprep.mubr.f32.mxu0 %v2891_v1 }
 0xf8c   :  { %2642 = vmatmul.mubr.msk.f32.gmra.mxu0 %vm439_vm1, %v1405_v20 }
 0xf8d   :  { %1569 = vmatprep.mubr.f32.mxu0 %v2891_v1 }
 0xf90   :  { %2643 = vmatmul.mubr.msk.f32.gmra.mxu0 %vm439_vm1, %v1406_v21 }
 0xf91   :  { %1839 = vmatprep.mubr.f32.mxu0 %v2891_v1 }
 0xf94   :  { %1840 = vmatmul.mubr.f32.vlgmr.msra.gmra.mxu0 %v2891_v1 }
 0xf95   :  { %1995 = vmatpush1.msra.mxu0 %v3524_v19  ;;  %2042 = vmatprep.mubr.f32.mxu0 %v2891_v1 }
 0xf96   :  { %1996 = vmatprep.subr.mxu0 %v3529_v22 }
 0xf97   :  { %1997 = vmatpush1.msra.mxu0 %v3531_v23 }
 0xf98   :  { %1998 = vmatprep.subr.mxu0 %v3535_v26 }
 0xf99   :  { %1999 = vmatpush1.msra.mxu0 %v3537_v27 }
 0xf9a   :  { %2000 = vmatprep.subr.mxu0 %v3541_v30 }
 0xf9b   :  { %2001 = vmatpush1.msra.mxu0 %v3543_v31 }
 0xf9c   :  { %2002 = vmatprep.subr.mxu0 %v3547_v34 }
 0xf9d   :  { %2003 = vmatpush1.msra.mxu0 %v3549_v35 }
 0xf9e   :  { %2004 = vmatprep.subr.mxu0 %v3553_v38 }
 0xf9f   :  { %2005 = vmatpush1.msra.mxu0 %v3555_v39 }
 0xfa0   :  { %2006 = vmatprep.subr.mxu0 %v3559_v2 }
 0xfa1   :  { %2007 = vmatpush1.msra.mxu0 %v3561_v3 }
 0xfa2   :  { %2008 = vmatprep.subr.mxu0 %v3565_v4 }
 0xfa3   :  { %2009 = vmatpush1.msra.mxu0 %v3567_v6 }
 0xfa4   :  { %2196 = vmatprep.subr.mxu0 %v3521_v17 }
0x1034   :  { %v1529_v40 = vpop.f32.mrf.mxu0 }
0x1035   :  { %v1667_v41 = vadd.f32 %v1666_v24, %v1529_v40 }
0x1036   :  { %v1531_v42 = vpop.f32.mrf.mxu0 }
0x1037   :  { %v1725_v9 = vadd.f32 %v3628_v37, %v1667_v41  ;;  %v1669_v47 = vadd.f32 %v1668_v28, %v1531_v42 }
0x1038   :  { %v1535_v50 = vpop.f32.mrf.mxu0 }
0x1039   :  { %v1726_v52 = vadd.f32 %v1722_v51, %v1669_v47  ;;  %v1673_v53 = vadd.f32 %v1672_v29, %v1535_v50 }
0x103a   :  { %v1537_v54 = vpop.f32.mrf.mxu0 }
0x103b   :  { %1742 = vst.msk [vmem:[#allocation2 + $0x8] sm:$0xff] %vm439_vm1, %v1726_v52  ;;  %v3635_v48 = vadd.f32 %v3628_v37, %v1673_v53  ;;  %v1675_v56 = vadd.f32 %v1674_v55, %v1537_v54 }
0x103c   :  { %v1541_v58 = vpop.f32.mrf.mxu0 }
0x103d   :  { %v1728_v59 = vadd.f32 %v1722_v51, %v1675_v56  ;;  %v1679_v43 = vadd.f32 %v1678_v32, %v1541_v58  ;;  %v1704_v32 = vpop.f32.mrf.mxu1 }
0x103e   :  { %v1543_v44 = vpop.f32.mrf.mxu0 }
0x103f   :  { %1744 = vst.msk [vmem:[#allocation2 + $0x18] sm:$0xff] %vm439_vm1, %v1728_v59  ;;  %v3639_v61 = vadd.f32 %v3628_v37, %v1679_v43  ;;  %v1681_v63 = vadd.f32 %v1680_v12, %v1543_v44 }
0x1040   :  { %v1547_v62 = vpop.f32.mrf.mxu0 }
0x1041   :  { %v1730_v0 = vadd.f32 %v1722_v51, %v1681_v63  ;;  %v1685_v13 = vadd.f32 %v1684_v36, %v1547_v62  ;;  %v3662_v62 = vld [vmem:[#allocation13] sm:$0xff] }
0x1042   :  { %v1549_v14 = vpop.f32.mrf.mxu0 }
0x1043   :  { %1746 = vst.msk [vmem:[#allocation2 + $0x28] sm:$0xff] %vm439_vm1, %v1730_v0  ;;  %v3643_v18 = vadd.f32 %v3628_v37, %v1685_v13  ;;  %v1687_v60 = vadd.f32 %v1686_v49, %v1549_v14  ;;  %v1708_v49 = vpop.f32.mrf.mxu1 }
0x1044   :  { %v1553_v8 = vpop.f32.mrf.mxu0 }
0x1045   :  { %v1732_v10 = vadd.f32 %v1722_v51, %v1687_v60  ;;  %v1691_v11 = vadd.f32 %v1690_v25, %v1553_v8  ;;  %v1710_v52 = vpop.f32.mrf.mxu1 }
0x1046   :  { %v1555_v45 = vpop.f32.mrf.mxu0 }
0x1047   :  { %1748 = vst.msk [vmem:[#allocation2 + $0x38] sm:$0xff] %vm439_vm1, %v1732_v10  ;;  %v3647_v33 = vadd.f32 %v3628_v37, %v1691_v11  ;;  %v1693_v46 = vadd.f32 %v1692_v57, %v1555_v45 }
0x1048   :  { %v1559_v20 = vpop.f32.mrf.mxu0 }
0x1049   :  { %v1734_v21 = vadd.f32 %v1722_v51, %v1693_v46  ;;  %v1697_v24 = vadd.f32 %v1696_v16, %v1559_v20 }
0x104a   :  { %v1561_v28 = vpop.f32.mrf.mxu0 }
0x104b   :  { %1750 = vst.msk [vmem:[#allocation2 + $0x48] sm:$0xff] %vm439_vm1, %v1734_v21  ;;  %v3651_v29 = vadd.f32 %v3628_v37, %v1697_v24  ;;  %v1699_v55 = vadd.f32 %v1698_v7, %v1561_v28 }
0x104c   :  { %v1565_v12 = vpop.f32.mrf.mxu0 }
0x104d   :  { %v1736_v36 = vadd.f32 %v1722_v51, %v1699_v55  ;;  %v1703_v5 = vadd.f32 %v1702_v15, %v1565_v12  ;;  %v1873_v12 = vld [vmem:[#allocation2 + $0x18] sm:$0xff] }
0x104e   :  { %v1567_v40 = vpop.f32.mrf.mxu0 }
0x104f   :  { %1752 = vst.msk [vmem:[#allocation2 + $0x58] sm:$0xff] %vm439_vm1, %v1736_v36  ;;  %v3655_v41 = vadd.f32 %v3628_v37, %v1703_v5  ;;  %v1705_v42 = vadd.f32 %v1704_v32, %v1567_v40 }
0x1050   :  { %v1571_v47 = vpop.f32.mrf.mxu0 }
0x1051   :  { %v1738_v25 = vadd.f32 %v1722_v51, %v1705_v42  ;;  %v1709_v50 = vadd.f32 %v1708_v49, %v1571_v47 }
0x1052   :  { %v1573_v53 = vpop.f32.mrf.mxu0 }
0x1053   :  { %1754 = vst.msk [vmem:[#allocation2 + $0x68] sm:$0xff] %vm439_vm1, %v1738_v25  ;;  %v3659_v54 = vadd.f32 %v3628_v37, %v1709_v50  ;;  %v1711_v56 = vadd.f32 %v1710_v52, %v1573_v53  ;;  %v1758_v37 = vld [vmem:[#allocation2 + $0x8] sm:$0xff] }
0x1054   :  { %v1841_v57 = vpop.f32.mrf.mxu0 }
0x1055   :  { %v1740_v58 = vadd.f32 %v1722_v51, %v1711_v56  ;;  %v1846_v59 = vadd.f32 %v1841_v57, %v1725_v9 }
0x1056   :  { %v1843_v16 = vpop.f32.mrf.mxu0 }
0x1057   :  { %1756 = vst.msk [vmem:[#allocation2 + $0x78] sm:$0xff] %vm439_vm1, %v1740_v58  ;;  %v2652_v43 = vmul.f32 -1.442695, %v1846_v59  ;;  %v1854_v0 = vadd.f32 %v3662_v62, %v1843_v16 }
0x1059   :  { %2726 = vpow2.f32 %v2652_v43 }
0x1066   :  { %v2727_v44 = vpop.eup %2726 }
0x1067   :  { %v1850_v63 = vadd.f32 1.0, %v2727_v44  ;;  %v1974_v44 = vld [vmem:[#allocation2 + $0x28] sm:$0xff] }
0x1069   :  { %2728 = vrcp.f32 %v1850_v63 }
0x1076   :  { %v2729_v13 = vpop.eup %2728 }
0x1077   :  { %v1855_v14 = vmul.f32 %v2729_v13, %v1854_v0 }
0x1079   :  { %v1856_v60 = vadd.f32 %v1855_v14, %v1758_v37 }
0x107b   :  { %2730 = vtanh.f32 %v1856_v60 }
0x1088   :  { %v2731_v7 = vpop.eup %2730 }
0x1089   :  { %v1858_v51 = vsub.f32 0.0, %v2731_v7 }
0x108b   :  { %1860 = vrot.lane.b32.xlu0 %v1858_v51, %s2892_s4 }
0x10fd   :  { %v1861_v9 = vpop.permute.xlu0 %1860 }
0x10fe   :  { %v1863_v8 = vmul.f32 %v2729_v13, %v1861_v9 }
0x1100   :  { %1865 = vrot.lane.b32.xlu1 %v1863_v8, %s2892_s4 }
0x1172   :  { %v1866_v10 = vpop.permute.xlu1 %1865 }
0x1173   :  { %v3667_v11 = vadd.f32 %v2731_v7, %v1866_v10 }
0x1175   :  { %2653 = vmatmul.mubr.msk.f32.vlgmr.msra.gmra.mxu1 %vm439_vm1, %v3667_v11 }
0x1176   :  { %2096 = vmatpush1.msra.mxu1 %v3524_v19  ;;  %2143 = vmatprep.mubr.f32.mxu1 %v2891_v1 }
0x1177   :  { %2097 = vmatprep.subr.mxu1 %v3529_v22 }
0x1178   :  { %2098 = vmatpush1.msra.mxu1 %v3531_v23 }
0x1179   :  { %2099 = vmatprep.subr.mxu1 %v3535_v26 }
0x117a   :  { %2100 = vmatpush1.msra.mxu1 %v3537_v27 }
0x117b   :  { %2101 = vmatprep.subr.mxu1 %v3541_v30 }
0x117c   :  { %2102 = vmatpush1.msra.mxu1 %v3543_v31 }
0x117d   :  { %2103 = vmatprep.subr.mxu1 %v3547_v34 }
0x117e   :  { %2104 = vmatpush1.msra.mxu1 %v3549_v35 }
0x117f   :  { %2105 = vmatprep.subr.mxu1 %v3553_v38 }
0x1180   :  { %2106 = vmatpush1.msra.mxu1 %v3555_v39 }
0x1181   :  { %2107 = vmatprep.subr.mxu1 %v3559_v2 }
0x1182   :  { %2108 = vmatpush1.msra.mxu1 %v3561_v3 }
0x1183   :  { %2109 = vmatprep.subr.mxu1 %v3565_v4 }
0x1184   :  { %2110 = vmatpush1.msra.mxu1 %v3567_v6 }
0x1185   :  { %2297 = vmatprep.subr.mxu1 %v3521_v17 }
0x1235   :  { %v1943_v45 = vpop.f32.mrf.mxu1 }
0x1236   :  { %v1948_v46 = vadd.f32 %v1943_v45, %v3635_v48 }
0x1237   :  { %v1945_v24 = vpop.f32.mrf.mxu1 }
0x1238   :  { %v2654_v15 = vmul.f32 -1.442695, %v1948_v46  ;;  %v1955_v28 = vadd.f32 %v1945_v24, %v3662_v62 }
0x123a   :  { %2732 = vpow2.f32 %v2654_v15 }
0x1247   :  { %v2733_v20 = vpop.eup %2732 }
0x1248   :  { %v1952_v21 = vadd.f32 1.0, %v2733_v20  ;;  %v2075_v20 = vld [vmem:[#allocation2 + $0x38] sm:$0xff] }
0x124a   :  { %2734 = vrcp.f32 %v1952_v21 }
0x1257   :  { %v2735_v55 = vpop.eup %2734 }
0x1258   :  { %v1956_v32 = vmul.f32 %v2735_v55, %v1955_v28 }
0x125a   :  { %v1957_v36 = vadd.f32 %v1956_v32, %v1873_v12 }
0x125c   :  { %2736 = vtanh.f32 %v1957_v36 }
0x1269   :  { %v2737_v5 = vpop.eup %2736 }
0x126a   :  { %v1959_v49 = vsub.f32 %v3667_v11, %v2737_v5 }
0x126c   :  { %1961 = vrot.lane.b32.xlu0 %v1959_v49, %s2892_s4 }
0x12de   :  { %v1962_v40 = vpop.permute.xlu0 %1961 }
0x12df   :  { %v1964_v48 = vmul.f32 %v2735_v55, %v1962_v40 }
0x12e1   :  { %1966 = vrot.lane.b32.xlu1 %v1964_v48, %s2892_s4 }
0x1353   :  { %v1967_v42 = vpop.permute.xlu1 %1966 }
0x1354   :  { %v3693_v47 = vadd.f32 %v2737_v5, %v1967_v42 }
0x1356   :  { %2655 = vmatmul.mubr.msk.f32.vlgmr.msra.gmra.mxu0 %vm439_vm1, %v3693_v47 }
0x1357   :  { %2197 = vmatpush1.msra.mxu0 %v3524_v19  ;;  %2244 = vmatprep.mubr.f32.mxu0 %v2891_v1 }
0x1358   :  { %2198 = vmatprep.subr.mxu0 %v3529_v22 }
0x1359   :  { %2199 = vmatpush1.msra.mxu0 %v3531_v23 }
0x135a   :  { %2200 = vmatprep.subr.mxu0 %v3535_v26 }
0x135b   :  { %2201 = vmatpush1.msra.mxu0 %v3537_v27 }
0x135c   :  { %2202 = vmatprep.subr.mxu0 %v3541_v30 }
0x135d   :  { %2203 = vmatpush1.msra.mxu0 %v3543_v31 }
0x135e   :  { %2204 = vmatprep.subr.mxu0 %v3547_v34 }
0x135f   :  { %2205 = vmatpush1.msra.mxu0 %v3549_v35 }
0x1360   :  { %2206 = vmatprep.subr.mxu0 %v3553_v38 }
0x1361   :  { %2207 = vmatpush1.msra.mxu0 %v3555_v39 }
0x1362   :  { %2208 = vmatprep.subr.mxu0 %v3559_v2 }
0x1363   :  { %2209 = vmatpush1.msra.mxu0 %v3561_v3 }
0x1364   :  { %2210 = vmatprep.subr.mxu0 %v3565_v4 }
0x1365   :  { %2211 = vmatpush1.msra.mxu0 %v3567_v6 }
0x1366   :  { %2398 = vmatprep.subr.mxu0 %v3521_v17 }
0x1416   :  { %v2044_v25 = vpop.f32.mrf.mxu0 }
0x1417   :  { %v2049_v50 = vadd.f32 %v2044_v25, %v3639_v61 }
0x1418   :  { %v2046_v57 = vpop.f32.mrf.mxu0 }
0x1419   :  { %v2656_v52 = vmul.f32 -1.442695, %v2049_v50  ;;  %v2056_v58 = vadd.f32 %v2046_v57, %v3662_v62 }
0x141b   :  { %2738 = vpow2.f32 %v2656_v52  ;;  %v2176_v52 = vld [vmem:[#allocation2 + $0x48] sm:$0xff] }
0x1428   :  { %v2739_v53 = vpop.eup %2738 }
0x1429   :  { %v2053_v56 = vadd.f32 1.0, %v2739_v53 }
0x142b   :  { %2740 = vrcp.f32 %v2053_v56 }
0x1438   :  { %v2741_v59 = vpop.eup %2740 }
0x1439   :  { %v2057_v43 = vmul.f32 %v2741_v59, %v2056_v58 }
0x143b   :  { %v2058_v63 = vadd.f32 %v2057_v43, %v1974_v44 }
0x143d   :  { %2742 = vtanh.f32 %v2058_v63 }
0x144a   :  { %v2743_v16 = vpop.eup %2742 }
0x144b   :  { %v2060_v0 = vsub.f32 %v3693_v47, %v2743_v16 }
0x144d   :  { %2062 = vrot.lane.b32.xlu0 %v2060_v0, %s2892_s4 }
0x14bf   :  { %v2063_v13 = vpop.permute.xlu0 %2062 }
0x14c0   :  { %v2065_v61 = vmul.f32 %v2741_v59, %v2063_v13 }
0x14c2   :  { %2067 = vrot.lane.b32.xlu1 %v2065_v61, %s2892_s4 }
0x1534   :  { %v2068_v14 = vpop.permute.xlu1 %2067 }
0x1535   :  { %v3719_v37 = vadd.f32 %v2743_v16, %v2068_v14 }
0x1537   :  { %2657 = vmatmul.mubr.msk.f32.vlgmr.msra.gmra.mxu1 %vm439_vm1, %v3719_v37 }
0x1538   :  { %2298 = vmatpush1.msra.mxu1 %v3524_v19  ;;  %2345 = vmatprep.mubr.f32.mxu1 %v2891_v1 }
0x1539   :  { %2299 = vmatprep.subr.mxu1 %v3529_v22 }
0x153a   :  { %2300 = vmatpush1.msra.mxu1 %v3531_v23 }
0x153b   :  { %2301 = vmatprep.subr.mxu1 %v3535_v26 }
0x153c   :  { %2302 = vmatpush1.msra.mxu1 %v3537_v27 }
0x153d   :  { %2303 = vmatprep.subr.mxu1 %v3541_v30 }
0x153e   :  { %2304 = vmatpush1.msra.mxu1 %v3543_v31 }
0x153f   :  { %2305 = vmatprep.subr.mxu1 %v3547_v34 }
0x1540   :  { %2306 = vmatpush1.msra.mxu1 %v3549_v35 }
0x1541   :  { %2307 = vmatprep.subr.mxu1 %v3553_v38 }
0x1542   :  { %2308 = vmatpush1.msra.mxu1 %v3555_v39 }
0x1543   :  { %2309 = vmatprep.subr.mxu1 %v3559_v2 }
0x1544   :  { %2310 = vmatpush1.msra.mxu1 %v3561_v3 }
0x1545   :  { %2311 = vmatprep.subr.mxu1 %v3565_v4 }
0x1546   :  { %2312 = vmatpush1.msra.mxu1 %v3567_v6 }
0x1547   :  { %2499 = vmatprep.subr.mxu1 %v3521_v17 }
0x15f7   :  { %v2145_v60 = vpop.f32.mrf.mxu1 }
0x15f8   :  { %v2150_v7 = vadd.f32 %v2145_v60, %v3643_v18 }
0x15f9   :  { %v2147_v10 = vpop.f32.mrf.mxu1 }
0x15fa   :  { %v2658_v51 = vmul.f32 -1.442695, %v2150_v7  ;;  %v2157_v45 = vadd.f32 %v2147_v10, %v3662_v62 }
0x15fc   :  { %2744 = vpow2.f32 %v2658_v51  ;;  %v2378_v51 = vld [vmem:[#allocation2 + $0x68] sm:$0xff] }
0x1609   :  { %v2745_v9 = vpop.eup %2744 }
0x160a   :  { %v2154_v8 = vadd.f32 1.0, %v2745_v9 }
0x160c   :  { %2746 = vrcp.f32 %v2154_v8 }
0x1619   :  { %v2747_v46 = vpop.eup %2746 }
0x161a   :  { %v2158_v15 = vmul.f32 %v2747_v46, %v2157_v45 }
0x161c   :  { %v2159_v21 = vadd.f32 %v2158_v15, %v2075_v20 }
0x161e   :  { %2748 = vtanh.f32 %v2159_v21 }
0x162b   :  { %v2749_v24 = vpop.eup %2748 }
0x162c   :  { %v2161_v28 = vsub.f32 %v3719_v37, %v2749_v24 }
0x162e   :  { %2163 = vrot.lane.b32.xlu0 %v2161_v28, %s2892_s4 }
0x16a0   :  { %v2164_v17 = vpop.permute.xlu0 %2163 }
0x16a1   :  { %v2166_v18 = vmul.f32 %v2747_v46, %v2164_v17 }
0x16a3   :  { %2168 = vrot.lane.b32.xlu1 %v2166_v18, %s2892_s4 }
0x1715   :  { %v2169_v55 = vpop.permute.xlu1 %2168 }
0x1716   :  { %v3745_v32 = vadd.f32 %v2749_v24, %v2169_v55 }
0x1718   :  { %2659 = vmatmul.mubr.msk.f32.vlgmr.msra.gmra.mxu0 %vm439_vm1, %v3745_v32 }
0x1719   :  { %2399 = vmatpush1.msra.mxu0 %v3524_v19  ;;  %2446 = vmatprep.mubr.f32.mxu0 %v2891_v1 }
0x171a   :  { %2400 = vmatprep.subr.mxu0 %v3529_v22 }
0x171b   :  { %2401 = vmatpush1.msra.mxu0 %v3531_v23 }
0x171c   :  { %2402 = vmatprep.subr.mxu0 %v3535_v26 }
0x171d   :  { %2403 = vmatpush1.msra.mxu0 %v3537_v27 }
0x171e   :  { %2404 = vmatprep.subr.mxu0 %v3541_v30 }
0x171f   :  { %2405 = vmatpush1.msra.mxu0 %v3543_v31 }
0x1720   :  { %2406 = vmatprep.subr.mxu0 %v3547_v34 }
0x1721   :  { %2407 = vmatpush1.msra.mxu0 %v3549_v35 }
0x1722   :  { %2408 = vmatprep.subr.mxu0 %v3553_v38 }
0x1723   :  { %2409 = vmatpush1.msra.mxu0 %v3555_v39 }
0x1724   :  { %2410 = vmatprep.subr.mxu0 %v3559_v2 }
0x1725   :  { %2411 = vmatpush1.msra.mxu0 %v3561_v3 }
0x1726   :  { %2412 = vmatprep.subr.mxu0 %v3565_v4 }
0x1727   :  { %2413 = vmatpush1.msra.mxu0 %v3567_v6 }
0x17d8   :  { %v2246_v12 = vpop.f32.mrf.mxu0 }
0x17d9   :  { %v2251_v36 = vadd.f32 %v2246_v12, %v3647_v33 }
0x17da   :  { %v2248_v48 = vpop.f32.mrf.mxu0 }
0x17db   :  { %v2660_v5 = vmul.f32 -1.442695, %v2251_v36  ;;  %v2258_v42 = vadd.f32 %v2248_v48, %v3662_v62 }
0x17dd   :  { %2750 = vpow2.f32 %v2660_v5  ;;  %v2479_v5 = vld [vmem:[#allocation2 + $0x78] sm:$0xff] }
0x17ea   :  { %v2751_v49 = vpop.eup %2750 }
0x17eb   :  { %v2255_v40 = vadd.f32 1.0, %v2751_v49 }
0x17ed   :  { %2752 = vrcp.f32 %v2255_v40 }
0x17fa   :  { %v2753_v25 = vpop.eup %2752 }
0x17fb   :  { %v2259_v50 = vmul.f32 %v2753_v25, %v2258_v42 }
0x17fd   :  { %v2260_v53 = vadd.f32 %v2259_v50, %v2176_v52  ;;  %v2071_v50 = vld [vmem:[%s3850_s12 + $0x10] sm:$0xff] }
0x17ff   :  { %2754 = vtanh.f32 %v2260_v53  ;;  %v2172_v53 = vld [vmem:[%s3850_s12 + $0x18] sm:$0xff] }
0x180c   :  { %v2755_v56 = vpop.eup %2754 }
0x180d   :  { %v2262_v57 = vsub.f32 %v3745_v32, %v2755_v56 }
0x180f   :  { %2264 = vrot.lane.b32.xlu0 %v2262_v57, %s2892_s4  ;;  %v2072_v57 = vmul.f32 %v2071_v50, %v3719_v37 }
0x1881   :  { %v2265_v58 = vpop.permute.xlu0 %2264 }
0x1882   :  { %v2267_v33 = vmul.f32 %v2753_v25, %v2265_v58  ;;  %v2273_v58 = vld [vmem:[%s3850_s12 + $0x20] sm:$0xff] }
0x1884   :  { %2269 = vrot.lane.b32.xlu1 %v2267_v33, %s2892_s4 }
0x18f6   :  { %v2270_v59 = vpop.permute.xlu1 %2269 }
0x18f7   :  { %v3770_v43 = vadd.f32 %v2755_v56, %v2270_v59  ;;  %v2173_v59 = vmul.f32 %v2172_v53, %v3745_v32 }
0x18f9   :  { %2661 = vmatmul.mubr.msk.f32.vlgmr.msra.gmra.mxu1 %vm439_vm1, %v3770_v43 }
0x18fa   :  { %2500 = vmatpush1.msra.mxu1 %v3524_v19  ;;  %2547 = vmatprep.mubr.f32.mxu1 %v2891_v1 }
0x18fb   :  { %2501 = vmatprep.subr.mxu1 %v3529_v22 }
0x18fc   :  { %2502 = vmatpush1.msra.mxu1 %v3531_v23 }
0x18fd   :  { %2503 = vmatprep.subr.mxu1 %v3535_v26 }
0x18fe   :  { %2504 = vmatpush1.msra.mxu1 %v3537_v27 }
0x18ff   :  { %2505 = vmatprep.subr.mxu1 %v3541_v30 }
0x1900   :  { %2506 = vmatpush1.msra.mxu1 %v3543_v31 }
0x1901   :  { %2507 = vmatprep.subr.mxu1 %v3547_v34 }
0x1902   :  { %2508 = vmatpush1.msra.mxu1 %v3549_v35  ;;  %v2277_v35 = vld [vmem:[#allocation2 + $0x58] sm:$0xff] }
0x1903   :  { %2509 = vmatprep.subr.mxu1 %v3553_v38 }
0x1904   :  { %2510 = vmatpush1.msra.mxu1 %v3555_v39 }
0x1905   :  { %2511 = vmatprep.subr.mxu1 %v3559_v2 }
0x1906   :  { %2512 = vmatpush1.msra.mxu1 %v3561_v3 }
0x1907   :  { %2513 = vmatprep.subr.mxu1 %v3565_v4 }
0x1908   :  { %2514 = vmatpush1.msra.mxu1 %v3567_v6 }
0x19b9   :  { %v2347_v1 = vpop.f32.mrf.mxu1 }
0x19ba   :  { %v2352_v19 = vadd.f32 %v2347_v1, %v3651_v29  ;;  %v2374_v1 = vld [vmem:[%s3850_s12 + $0x28] sm:$0xff] }
0x19bb   :  { %v2349_v27 = vpop.f32.mrf.mxu1 }
0x19bc   :  { %v2662_v22 = vmul.f32 -1.442695, %v2352_v19  ;;  %v2359_v30 = vadd.f32 %v2349_v27, %v3662_v62  ;;  %v2274_v19 = vmul.f32 %v2273_v58, %v3770_v43  ;;  %v2576_v27 = vld [vmem:[%s3850_s12 + $0x38] sm:$0xff] }
0x19be   :  { %2756 = vpow2.f32 %v2662_v22 }
0x19cb   :  { %v2757_v23 = vpop.eup %2756 }
0x19cc   :  { %v2356_v26 = vadd.f32 1.0, %v2757_v23 }
0x19ce   :  { %2758 = vrcp.f32 %v2356_v26 }
0x19db   :  { %v2759_v31 = vpop.eup %2758 }
0x19dc   :  { %v2360_v34 = vmul.f32 %v2759_v31, %v2359_v30 }
0x19de   :  { %v2361_v38 = vadd.f32 %v2360_v34, %v2277_v35 }
0x19e0   :  { %2760 = vtanh.f32 %v2361_v38 }
0x19ed   :  { %v2761_v39 = vpop.eup %2760 }
0x19ee   :  { %v2363_v2 = vsub.f32 %v3770_v43, %v2761_v39 }
0x19f0   :  { %2365 = vrot.lane.b32.xlu0 %v2363_v2, %s2892_s4 }
0x1a62   :  { %v2366_v3 = vpop.permute.xlu0 %2365 }
0x1a63   :  { %v2368_v4 = vmul.f32 %v2759_v31, %v2366_v3 }
0x1a65   :  { %2370 = vrot.lane.b32.xlu1 %v2368_v4, %s2892_s4 }
0x1ad7   :  { %v2371_v6 = vpop.permute.xlu1 %2370 }
0x1ad8   :  { %v2373_v29 = vadd.f32 %v2761_v39, %v2371_v6  ;;  %v2667_v39 = vld [vmem:[#allocation5] ss:$0 sm:$0xff] }
0x1ada   :  { %2663 = vmatmul.mubr.msk.f32.vlgmr.msra.gmra.mxu0 %vm439_vm1, %v2373_v29  ;;  %v2375_v37 = vmul.f32 %v2374_v1, %v2373_v29 }
0x1b9a   :  { %v2448_v44 = vpop.f32.mrf.mxu0 }
0x1b9b   :  { %v2453_v63 = vadd.f32 %v2448_v44, %v3655_v41 }
0x1b9c   :  { %v2450_v61 = vpop.f32.mrf.mxu0 }
0x1b9d   :  { %v2664_v16 = vmul.f32 -1.442695, %v2453_v63  ;;  %v2460_v14 = vadd.f32 %v2450_v61, %v3662_v62 }
0x1b9f   :  { %2762 = vpow2.f32 %v2664_v16 }
0x1bac   :  { %v2763_v0 = vpop.eup %2762 }
0x1bad   :  { %v2457_v13 = vadd.f32 1.0, %v2763_v0 }
0x1baf   :  { %2764 = vrcp.f32 %v2457_v13 }
0x1bbc   :  { %v2765_v60 = vpop.eup %2764 }
0x1bbd   :  { %v2461_v7 = vmul.f32 %v2765_v60, %v2460_v14 }
0x1bbf   :  { %v2462_v9 = vadd.f32 %v2461_v7, %v2378_v51 }
0x1bc1   :  { %2766 = vtanh.f32 %v2462_v9 }
0x1bce   :  { %v2767_v8 = vpop.eup %2766 }
0x1bcf   :  { %v2464_v10 = vsub.f32 %v2373_v29, %v2767_v8 }
0x1bd1   :  { %2466 = vrot.lane.b32.xlu0 %v2464_v10, %s2892_s4 }
0x1c43   :  { %v2467_v45 = vpop.permute.xlu0 %2466 }
0x1c44   :  { %v2469_v46 = vmul.f32 %v2765_v60, %v2467_v45 }
0x1c46   :  { %2471 = vrot.lane.b32.xlu1 %v2469_v46, %s2892_s4 }
0x1cb8   :  { %v2472_v41 = vpop.permute.xlu1 %2471 }
0x1cb9   :  { %v2474_v15 = vadd.f32 %v2767_v8, %v2472_v41 }
0x1cbb   :  { %2665 = vmatmul.mubr.msk.f32.vlgmr.msra.gmra.mxu1 %vm439_vm1, %v2474_v15 }
0x1d7b   :  { %v2549_v20 = vpop.f32.mrf.mxu1 }
0x1d7c   :  { %v2554_v21 = vadd.f32 %v2549_v20, %v3659_v54  ;;  %v1970_v54 = vld [vmem:[%s3850_s12 + $0x8] sm:$0xff] }
0x1d7d   :  { %v2551_v18 = vpop.f32.mrf.mxu1  ;;  %v1971_v52 = vmul.f32 %v1970_v54, %v3693_v47 }
0x1d7e   :  { %v2666_v24 = vmul.f32 -1.442695, %v2554_v21  ;;  %v2561_v55 = vadd.f32 %v2551_v18, %v3662_v62  ;;  %v1869_v62 = vld [vmem:[%s3850_s12] sm:$0xff] }
0x1d7f   :  { %v1870_v56 = vmul.f32 %v1869_v62, %v3667_v11  ;;  %v2475_v11 = vld [vmem:[%s3850_s12 + $0x30] sm:$0xff] }
0x1d80   :  { %2768 = vpow2.f32 %v2666_v24  ;;  %v2476_v26 = vmul.f32 %v2475_v11, %v2474_v15 }
0x1d81   :  { %v1972_v33 = vadd.f32 %v1971_v52, %v1870_v56 }
0x1d83   :  { %v2073_v47 = vadd.f32 %v2072_v57, %v1972_v33 }
0x1d85   :  { %v2174_v22 = vadd.f32 %v2173_v59, %v2073_v47 }
0x1d87   :  { %v2275_v23 = vadd.f32 %v2274_v19, %v2174_v22 }
0x1d89   :  { %v2376_v31 = vadd.f32 %v2375_v37, %v2275_v23 }
0x1d8b   :  { %v2477_v35 = vadd.f32 %v2476_v26, %v2376_v31 }
0x1d8d   :  { %v2769_v28 = vpop.eup %2768 }
0x1d8e   :  { %v2558_v17 = vadd.f32 1.0, %v2769_v28 }
0x1d90   :  { %2770 = vrcp.f32 %v2558_v17 }
0x1d9d   :  { %v2771_v12 = vpop.eup %2770 }
0x1d9e   :  { %v2562_v36 = vmul.f32 %v2771_v12, %v2561_v55 }
0x1da0   :  { %v2563_v49 = vadd.f32 %v2562_v36, %v2479_v5 }
0x1da2   :  { %2772 = vtanh.f32 %v2563_v49 }
0x1daf   :  { %v2773_v40 = vpop.eup %2772 }
0x1db0   :  { %v2565_v48 = vsub.f32 %v2474_v15, %v2773_v40 }
0x1db2   :  { %2567 = vrot.lane.b32.xlu0 %v2565_v48, %s2892_s4 }
0x1e24   :  { %v2568_v42 = vpop.permute.xlu0 %2567 }
0x1e25   :  { %v2570_v25 = vmul.f32 %v2771_v12, %v2568_v42 }
0x1e27   :  { %2572 = vrot.lane.b32.xlu1 %v2570_v25, %s2892_s4 }
0x1e99   :  { %v2573_v32 = vpop.permute.xlu1 %2572 }
0x1e9a   :  { %v2575_v30 = vadd.f32 %v2773_v40, %v2573_v32 }
0x1e9c   :  { %v2577_v34 = vmul.f32 %v2576_v27, %v2575_v30 }
0x1e9e   :  { %v2578_v38 = vadd.f32 %v2577_v34, %v2477_v35 }
0x1ea0   :  { %v2579_v43 = vsel %vm439_vm1, %v2578_v38, 0.0 }
0x1ea1   :  { %2580 = vadd.xlane.f32.xlu0 %v2579_v43 }
0x1f2a   :  { %v2581_v2 = vpop.xlane.xlu0 %2580 }
0x1f2b   :  { %v2589_v3 = vadd.f32 %v2667_v39, %v2581_v2 }
0x1f2d   :  { %v2668_v4 = vmul.f32 -1.442695, %v2589_v3 }
0x1f2f   :  { %2774 = vpow2.f32 %v2668_v4 }
0x1f3c   :  { %v2775_v6 = vpop.eup %2774 }
0x1f3d   :  { %v2593_v29 = vadd.f32 1.0, %v2775_v6 }
0x1f3f   :  { %2776 = vrcp.f32 %v2593_v29 }
0x1f4c   :  { %v2777_v44 = vpop.eup %2776 }
0x1f4d   :  { %2597 = vst.msk [vmem:[%s3852_s14] sm:$0xff] %vm2596_vm2, %v2777_v44 }
0x1f4e   :  { %2602 = vsyncpa [#allocation7], 1 }
0x1f4f   :  { %2603 = vsyncpa [#allocation9], 1 }
0x1f50   :  { %2604 = vsyncpa [#allocation12], 1 }

</bundles_post_ra>
